<compile_context>
chip_gen: v5e
topology: v5e:2x2
jax: 0.10.0
libtpu: 0.0.40
codegen_flags: <defaults>
</compile_context>

<pallas_src>
import functools
import math

import jax
import jax.numpy as jnp
from jax.experimental import pallas as pl
from jax.experimental.pallas import tpu as pltpu

LN_EPS = 1e-12
_BF16 = jnp.bfloat16
_F32 = jnp.float32


# ----------------------------- in-kernel math helpers -----------------------------

def _gelu(x):
    # tanh-approximation GELU (EUP tanh instead of a ~10-op VALU erf polynomial).
    c = 0.7978845608028654  # sqrt(2/pi)
    return 0.5 * x * (1.0 + jnp.tanh(c * (x + 0.044715 * x * x * x)))


def _layernorm(x, gamma, beta):
    mu = jnp.mean(x, axis=-1, keepdims=True)
    var = jnp.mean(jnp.square(x - mu), axis=-1, keepdims=True)
    return (x - mu) * jax.lax.rsqrt(var + LN_EPS) * gamma + beta


# ----------------------------------- kernels ---------------------------------------

def fused_encoder_kernel(num_heads,
                         h_ref, m_ref,
                         wqkv_ref, bqkv_ref, wo_ref, bo_ref, g1_ref, be1_ref,
                         wi_ref, bi_ref, wo2_ref, bo2_ref, g2_ref, be2_ref,
                         out_ref):
    """All encoder layers: one batch tile per grid step (axis 0), layers along axis 1.

    The output block is VMEM-resident across the layer axis and is used as the carried
    hidden state, so activations never go back to HBM between layers."""
    layer = pl.program_id(1)

    @pl.when(layer == 0)
    def _():
        out_ref[...] = h_ref[...]          # seed the carry with the incoming hidden states

    bt, S, H = out_ref.shape
    nh = num_heads
    hd = H // nh
    M = bt * S
    scale = 1.0 / math.sqrt(hd)

    x = out_ref[...].reshape(M, H)                        # running hidden state (f32)
    ext = (1.0 - m_ref[...][:, 0, :]) * -10000.0          # [bt, S] additive mask

    # ---- fused QKV projection: one (M,H)x(H,3H) bf16 MXU matmul, f32 accumulation ----
    qkv = jnp.dot(x.astype(_BF16), wqkv_ref[...],
                  preferred_element_type=_F32) + bqkv_ref[...]            # [M, 3H] f32
    qkv_b = qkv.astype(_BF16)

    # ---- head-batched attention: single leading batch dim of size bt*nh --------------
    def gather_heads(col0):
        return jnp.stack(
            [qkv_b[b * S:(b + 1) * S, col0 + h * hd: col0 + (h + 1) * hd]
             for b in range(bt) for h in range(nh)], axis=0)              # [bt*nh, S, hd]

    qh = gather_heads(0)
    kh = gather_heads(H)
    vh = gather_heads(2 * H)

    ext_nb = jnp.broadcast_to(ext[:, None, :], (bt, nh, S)).reshape(bt * nh, S)

    scores = jnp.einsum("nqd,nkd->nqk", qh, kh,
                        preferred_element_type=_F32) * scale              # [bt*nh, S, S]
    scores = scores + ext_nb[:, None, :]
    scores = scores - jnp.max(scores, axis=-1, keepdims=True)
    p = jnp.exp(scores)
    probs = p * pl.reciprocal(jnp.sum(p, axis=-1, keepdims=True), approx=True)

    ctx = jnp.einsum("nqk,nkd->nqd", probs.astype(_BF16), vh,
                     preferred_element_type=_F32)                         # [bt*nh, S, hd]

    rows = [jnp.concatenate([ctx[b * nh + h] for h in range(nh)], axis=-1)
            for b in range(bt)]                                           # bt x [S, H]
    ctx2d = rows[0] if bt == 1 else jnp.concatenate(rows, axis=0)         # [M, H]

    # ---- attention output projection + add & LayerNorm -------------------------------
    attn = jnp.dot(ctx2d.astype(_BF16), wo_ref[...],
                   preferred_element_type=_F32) + bo_ref[...]
    x1 = _layernorm(attn + x, g1_ref[...], be1_ref[...])

    # ---- GELU feed-forward + add & LayerNorm ------------------------------------------
    h1 = jnp.dot(x1.astype(_BF16), wi_ref[...],
                 preferred_element_type=_F32) + bi_ref[...]
    ffn = jnp.dot(_gelu(h1).astype(_BF16), wo2_ref[...],
                  preferred_element_type=_F32) + bo2_ref[...]
    x2 = _layernorm(ffn + x1, g2_ref[...], be2_ref[...])

    out_ref[...] = x2.reshape(bt, S, H)


def pooler_classifier_kernel(first_ref, wp_ref, bp_ref, wc_ref, bc_ref, out_ref):
    """BertPooler (first token -> Linear -> tanh) + classifier; lane-dense padded output."""
    first = first_ref[...]                                                # [B, H] f32
    pooled = jnp.tanh(jnp.dot(first.astype(_BF16), wp_ref[...],
                              preferred_element_type=_F32) + bp_ref[...])
    out_ref[...] = jnp.dot(pooled.astype(_BF16), wc_ref[...],
                           preferred_element_type=_F32) + bc_ref[...]


# ----------------------------------- wrappers ---------------------------------------

def _choose_batch_tile(B, S):
    """>=256 MXU rows per step when possible, but keep >=2 steps on the parallel batch
    axis so both v7x TensorCores get work."""
    bt = max(1, min(B, -(-256 // S)))
    while B % bt:
        bt -= 1
    if B >= 2 and B // bt < 2:
        bt = max(1, B // 2)
        while bt > 1 and B % bt:
            bt -= 1
    return bt


def back_bert_forward(hidden_states, attention_mask, layers, pooler, classifier,
                      num_heads, batch_tile=None):
    B, S, H = hidden_states.shape
    L = len(layers)
    I = layers[0]["wi"].shape[1]
    bt = _choose_batch_tile(B, S) if batch_tile is None else batch_tile
    assert B % bt == 0

    # ---- stack per-layer params with a leading layer axis; matmul weights -> bf16 ----
    def stack(name, dtype=_F32):
        return jnp.stack([p[name] for p in layers], axis=0).astype(dtype)

    wqkv = jnp.stack([jnp.concatenate([p["wq"], p["wk"], p["wv"]], axis=1)
                      for p in layers], axis=0).astype(_BF16)             # [L, H, 3H]
    bqkv = jnp.stack([jnp.concatenate([p["bq"], p["bk"], p["bv"]], axis=1)
                      for p in layers], axis=0)                           # [L, 1, 3H] f32
    wo, bo = stack("wo", _BF16), stack("bo")
    g1, be1 = stack("g1"), stack("be1")
    wi, bi = stack("wi", _BF16), stack("bi")
    wo2, bo2 = stack("wo2", _BF16), stack("bo2")
    g2, be2 = stack("g2"), stack("be2")

    x = hidden_states.astype(_F32)
    mask3 = attention_mask.reshape(B, 1, S).astype(_F32)

    hid_spec = pl.BlockSpec((bt, S, H), lambda b, l: (b, 0, 0))
    lay = lambda b, l: (l, 0, 0)
    w_specs = [
        pl.BlockSpec((pl.Squeezed(), H, 3 * H), lay),   # wqkv
        pl.BlockSpec((pl.Squeezed(), 1, 3 * H), lay),   # bqkv
        pl.BlockSpec((pl.Squeezed(), H, H), lay),       # wo
        pl.BlockSpec((pl.Squeezed(), 1, H), lay),       # bo
        pl.BlockSpec((pl.Squeezed(), 1, H), lay),       # g1
        pl.BlockSpec((pl.Squeezed(), 1, H), lay),       # be1
        pl.BlockSpec((pl.Squeezed(), H, I), lay),       # wi
        pl.BlockSpec((pl.Squeezed(), 1, I), lay),       # bi
        pl.BlockSpec((pl.Squeezed(), I, H), lay),       # wo2
        pl.BlockSpec((pl.Squeezed(), 1, H), lay),       # bo2
        pl.BlockSpec((pl.Squeezed(), 1, H), lay),       # g2
        pl.BlockSpec((pl.Squeezed(), 1, H), lay),       # be2
    ]

    # VMEM budget: double-buffered blocks + headroom, clamped to [default, v7x physical].
    block_bytes = (2 * bt * S * H * 4                       # hidden in + carry/out (f32)
                   + bt * S * 4                             # mask
                   + 2 * (H * 3 * H + H * H + 2 * H * I)    # bf16 weights
                   + 4 * (3 * H + I + 6 * H))               # f32 biases + LN params
    vmem_limit = int(min(64 * 1024 * 1024,
                         max(32 * 1024 * 1024, 2 * block_bytes + 8 * 1024 * 1024)))

    hidden_out = pl.pallas_call(
        functools.partial(fused_encoder_kernel, num_heads),
        grid=(B // bt, L),
        in_specs=[hid_spec, pl.BlockSpec((bt, 1, S), lambda b, l: (b, 0, 0))] + w_specs,
        out_specs=hid_spec,
        out_shape=jax.ShapeDtypeStruct((B, S, H), _F32),
        compiler_params=pltpu.CompilerParams(
            dimension_semantics=("parallel", "arbitrary"),
            vmem_limit_bytes=vmem_limit),
    )(x, mask3, wqkv, bqkv, wo, bo, g1, be1, wi, bi, wo2, bo2, g2, be2)

    # ---- pooler + classifier: ship only the first token; pad logits to 128 lanes ----
    first = hidden_out[:, 0, :]                                           # [B, H]
    num_labels = classifier["wc"].shape[1]
    lp = ((num_labels + 127) // 128) * 128
    wc_pad = jnp.zeros((H, lp), _F32).at[:, :num_labels].set(classifier["wc"]).astype(_BF16)
    bc_pad = jnp.zeros((1, lp), _F32).at[:, :num_labels].set(classifier["bc"])
    wp = pooler["wp"].astype(_BF16)
    bp = pooler["bp"]

    logits_pad = pl.pallas_call(
        pooler_classifier_kernel,
        grid=(1,),
        in_specs=[pl.BlockSpec((B, H), lambda i: (0, 0)),
                  pl.BlockSpec((H, H), lambda i: (0, 0)),
                  pl.BlockSpec((1, H), lambda i: (0, 0)),
                  pl.BlockSpec((H, lp), lambda i: (0, 0)),
                  pl.BlockSpec((1, lp), lambda i: (0, 0))],
        out_specs=pl.BlockSpec((B, lp), lambda i: (0, 0)),
        out_shape=jax.ShapeDtypeStruct((B, lp), _F32),
        compiler_params=pltpu.CompilerParams(dimension_semantics=("arbitrary",)),
    )(first, wp, bp, wc_pad, bc_pad)
    return logits_pad[:, :num_labels]


# ------------------------------ params / reference ----------------------------------

def init_params(key, num_layers, H, I, num_labels):
    def nrm(k, shape):
        return jax.random.normal(k, shape, jnp.float32) * 0.02

    layers = []
    for _ in range(num_layers):
        key, *ks = jax.random.split(key, 13)
        layers.append(dict(
            wq=nrm(ks[0], (H, H)), bq=nrm(ks[1], (1, H)),
            wk=nrm(ks[2], (H, H)), bk=nrm(ks[3], (1, H)),
            wv=nrm(ks[4], (H, H)), bv=nrm(ks[5], (1, H)),
            wo=nrm(ks[6], (H, H)), bo=nrm(ks[7], (1, H)),
            g1=jnp.ones((1, H), jnp.float32), be1=jnp.zeros((1, H), jnp.float32),
            wi=nrm(ks[8], (H, I)), bi=nrm(ks[9], (1, I)),
            wo2=nrm(ks[10], (I, H)), bo2=nrm(ks[11], (1, H)),
            g2=jnp.ones((1, H), jnp.float32), be2=jnp.zeros((1, H), jnp.float32),
        ))
    key, k1, k2, k3, k4 = jax.random.split(key, 5)
    pooler = dict(wp=nrm(k1, (H, H)), bp=nrm(k2, (1, H)))
    classifier = dict(wc=nrm(k3, (H, num_labels)), bc=nrm(k4, (1, num_labels)))
    return layers, pooler, classifier


def reference_forward(hidden_states, attention_mask, layers, pooler, classifier, num_heads):
    """Pure-JAX reference with the same precision policy as the kernels
    (bf16 matmul inputs, f32 accumulation, f32 LayerNorm/softmax, tanh GELU)."""
    B, S, H = hidden_states.shape
    nh = num_heads
    hd = H // nh

    def mm(a, w):
        return jnp.dot(a.astype(_BF16), w.astype(_BF16), preferred_element_type=_F32)

    ext = (1.0 - attention_mask)[:, None, None, :] * -10000.0
    x = hidden_states.astype(_F32)
    for p in layers:
        q = mm(x, p["wq"]) + p["bq"]
        k = mm(x, p["wk"]) + p["bk"]
        v = mm(x, p["wv"]) + p["bv"]
        split = lambda t: t.reshape(B, S, nh, hd).transpose(0, 2, 1, 3).astype(_BF16)
        qh, kh, vh = split(q), split(k), split(v)
        scores = jnp.einsum("bnqd,bnkd->bnqk", qh, kh,
                            preferred_element_type=_F32) / math.sqrt(hd) + ext
        probs = jax.nn.softmax(scores, axis=-1)
        ctx = jnp.einsum("bnqk,bnkd->bnqd", probs.astype(_BF16), vh,
                         preferred_element_type=_F32)
        ctx = ctx.transpose(0, 2, 1, 3).reshape(B, S, H)
        x1 = _layernorm(mm(ctx, p["wo"]) + p["bo"] + x, p["g1"], p["be1"])
        ffn = mm(_gelu(mm(x1, p["wi"]) + p["bi"]), p["wo2"]) + p["bo2"]
        x = _layernorm(ffn + x1, p["g2"], p["be2"])
    pooled = jnp.tanh(mm(x[:, 0, :], pooler["wp"]) + pooler["bp"])
    return mm(pooled, classifier["wc"]) + classifier["bc"]


# --------------------------------------- main ---------------------------------------

if __name__ == "__main__":
    B, S, H, I = 2, 8, 32, 64
    NUM_HEADS, NUM_LABELS = 4, 2
    NUM_BACK_LAYERS = 6          # encoder_layers[6:] of a 12-layer BERT encoder

    key = jax.random.PRNGKey(0)
    kx, kparams = jax.random.split(key)
    hidden_states = jax.random.normal(kx, (B, S, H), jnp.float32)
    # batch 0: no padding; batch 1: last 3 positions padded (mask=0)
    attention_mask = jnp.stack([
        jnp.ones((S,), jnp.float32),
        jnp.concatenate([jnp.ones((S - 3,), jnp.float32), jnp.zeros((3,), jnp.float32)]),
    ], axis=0)

    layers, pooler, classifier = init_params(kparams, NUM_BACK_LAYERS, H, I, NUM_LABELS)

    logits = back_bert_forward(hidden_states, attention_mask, layers, pooler,
                               classifier, NUM_HEADS)
    logits = jax.block_until_ready(logits)

    ref = reference_forward(hidden_states, attention_mask, layers, pooler,
                            classifier, NUM_HEADS)
    assert logits.shape == (B, NUM_LABELS), logits.shape
    assert jnp.allclose(logits, ref, atol=1e-2, rtol=1e-2), (logits, ref)
    print("KERNEL_OK")
</pallas_src>

<mosaic_0001>
module attributes {stable_mosaic.version = 11 : i64} {
  func.func @fused_encoder_kernel(%arg0: i32, %arg1: i32, %arg2: memref<1x8x32xf32, #tpu.memory_space<vmem>>, %arg3: memref<1x1x8xf32, #tpu.memory_space<vmem>>, %arg4: memref<1x32x96xbf16, #tpu.memory_space<vmem>>, %arg5: memref<1x1x96xf32, #tpu.memory_space<vmem>>, %arg6: memref<1x32x32xbf16, #tpu.memory_space<vmem>>, %arg7: memref<1x1x32xf32, #tpu.memory_space<vmem>>, %arg8: memref<1x1x32xf32, #tpu.memory_space<vmem>>, %arg9: memref<1x1x32xf32, #tpu.memory_space<vmem>>, %arg10: memref<1x32x64xbf16, #tpu.memory_space<vmem>>, %arg11: memref<1x1x64xf32, #tpu.memory_space<vmem>>, %arg12: memref<1x64x32xbf16, #tpu.memory_space<vmem>>, %arg13: memref<1x1x32xf32, #tpu.memory_space<vmem>>, %arg14: memref<1x1x32xf32, #tpu.memory_space<vmem>>, %arg15: memref<1x1x32xf32, #tpu.memory_space<vmem>>, %arg16: memref<1x8x32xf32, #tpu.memory_space<vmem>>) attributes {dimension_semantics = [#tpu.dimension_semantics<parallel>, #tpu.dimension_semantics<arbitrary>], iteration_bounds = array<i64: 2, 6>, scalar_prefetch = 0 : i64, scratch_operands = 0 : i64, tpu.core_type = #tpu.core_type<tc>, window_params = [{transform_indices = @transform_0, window_bounds = array<i64: 1, 8, 32>}, {transform_indices = @transform_1, window_bounds = array<i64: 1, 1, 8>}, {transform_indices = @transform_2, window_bounds = array<i64: 1, 32, 96>}, {transform_indices = @transform_3, window_bounds = array<i64: 1, 1, 96>}, {transform_indices = @transform_4, window_bounds = array<i64: 1, 32, 32>}, {transform_indices = @transform_5, window_bounds = array<i64: 1, 1, 32>}, {transform_indices = @transform_6, window_bounds = array<i64: 1, 1, 32>}, {transform_indices = @transform_7, window_bounds = array<i64: 1, 1, 32>}, {transform_indices = @transform_8, window_bounds = array<i64: 1, 32, 64>}, {transform_indices = @transform_9, window_bounds = array<i64: 1, 1, 64>}, {transform_indices = @transform_10, window_bounds = array<i64: 1, 64, 32>}, {transform_indices = @transform_11, window_bounds = array<i64: 1, 1, 32>}, {transform_indices = @transform_12, window_bounds = array<i64: 1, 1, 32>}, {transform_indices = @transform_13, window_bounds = array<i64: 1, 1, 32>}, {transform_indices = @transform_14, window_bounds = array<i64: 1, 8, 32>}]} {
    %c0_i32 = arith.constant 0 : i32
    %0 = arith.cmpi eq, %arg1, %c0_i32 : i32
    %1 = arith.extui %0 : i1 to i32
    %c0_i32_0 = arith.constant 0 : i32
    %2 = arith.cmpi ne, %1, %c0_i32_0 : i32
    scf.if %2 {
      %c0_69 = arith.constant 0 : index
      %c0_70 = arith.constant 0 : index
      %c0_71 = arith.constant 0 : index
      %171 = vector.load %arg2[%c0_69, %c0_70, %c0_71] : memref<1x8x32xf32, #tpu.memory_space<vmem>>, vector<1x8x32xf32>
      %c0_72 = arith.constant 0 : index
      %c0_73 = arith.constant 0 : index
      %c0_74 = arith.constant 0 : index
      %172 = vector.load %arg16[%c0_72, %c0_73, %c0_74] : memref<1x8x32xf32, #tpu.memory_space<vmem>>, vector<1x8x32xf32>
      tpu.vector_store %arg16[%c0_72, %c0_73, %c0_74], %171 {strides = array<i32>} : memref<1x8x32xf32, #tpu.memory_space<vmem>>, vector<1x8x32xf32>,
    } else {
    }
    %c0 = arith.constant 0 : index
    %c0_1 = arith.constant 0 : index
    %c0_2 = arith.constant 0 : index
    %3 = vector.load %arg16[%c0, %c0_1, %c0_2] : memref<1x8x32xf32, #tpu.memory_space<vmem>>, vector<1x8x32xf32>
    %4 = vector.shape_cast %3 : vector<1x8x32xf32> to vector<8x32xf32>
    %c0_3 = arith.constant 0 : index
    %c0_4 = arith.constant 0 : index
    %c0_5 = arith.constant 0 : index
    %5 = vector.load %arg3[%c0_3, %c0_4, %c0_5] : memref<1x1x8xf32, #tpu.memory_space<vmem>>, vector<1x1x8xf32>
    %6 = vector.shape_cast %5 : vector<1x1x8xf32> to vector<1x8xf32>
    %cst = arith.constant 1.000000e+00 : f32
    %7 = vector.broadcast %cst : f32 to vector<1x8xf32>
    %8 = arith.subf %7, %6 : vector<1x8xf32>
    %cst_6 = arith.constant -1.000000e+04 : f32
    %9 = vector.broadcast %cst_6 : f32 to vector<1x8xf32>
    %10 = arith.mulf %8, %9 : vector<1x8xf32>
    %11 = arith.truncf %4 : vector<8x32xf32> to vector<8x32xbf16>
    %c0_7 = arith.constant 0 : index
    %c0_8 = arith.constant 0 : index
    %c0_9 = arith.constant 0 : index
    %12 = vector.load %arg4[%c0_7, %c0_8, %c0_9] : memref<1x32x96xbf16, #tpu.memory_space<vmem>>, vector<1x32x96xbf16>
    %13 = vector.shape_cast %12 : vector<1x32x96xbf16> to vector<32x96xbf16>
    %cst_10 = arith.constant dense<0.000000e+00> : vector<8x96xf32>
    %14 = tpu.matmul %11, %13, %cst_10 {dimension_numbers = #tpu.dot_dimension_numbers<[1], [0], [0], [1], [0, 0, 1, 1], [], []>} : vector<8x32xbf16>, vector<32x96xbf16>, vector<8x96xf32> -> vector<8x96xf32>
    %c0_11 = arith.constant 0 : index
    %c0_12 = arith.constant 0 : index
    %c0_13 = arith.constant 0 : index
    %15 = vector.load %arg5[%c0_11, %c0_12, %c0_13] : memref<1x1x96xf32, #tpu.memory_space<vmem>>, vector<1x1x96xf32>
    %16 = vector.shape_cast %15 : vector<1x1x96xf32> to vector<1x96xf32>
    %17 = vector.broadcast %16 : vector<1x96xf32> to vector<8x96xf32>
    %18 = arith.addf %14, %17 : vector<8x96xf32>
    %19 = arith.truncf %18 : vector<8x96xf32> to vector<8x96xbf16>
    %20 = vector.extract_strided_slice %19 {offsets = [0, 0], sizes = [8, 8], strides = [1, 1]} : vector<8x96xbf16> to vector<8x8xbf16>
    %21 = vector.extract_strided_slice %19 {offsets = [0, 8], sizes = [8, 8], strides = [1, 1]} : vector<8x96xbf16> to vector<8x8xbf16>
    %22 = vector.extract_strided_slice %19 {offsets = [0, 16], sizes = [8, 8], strides = [1, 1]} : vector<8x96xbf16> to vector<8x8xbf16>
    %23 = vector.extract_strided_slice %19 {offsets = [0, 24], sizes = [8, 8], strides = [1, 1]} : vector<8x96xbf16> to vector<8x8xbf16>
    %24 = vector.shape_cast %20 : vector<8x8xbf16> to vector<1x8x8xbf16>
    %25 = vector.shape_cast %21 : vector<8x8xbf16> to vector<1x8x8xbf16>
    %26 = vector.shape_cast %22 : vector<8x8xbf16> to vector<1x8x8xbf16>
    %27 = vector.shape_cast %23 : vector<8x8xbf16> to vector<1x8x8xbf16>
    %28 = tpu.concatenate %24, %25, %26, %27 in 0 : vector<1x8x8xbf16>, vector<1x8x8xbf16>, vector<1x8x8xbf16>, vector<1x8x8xbf16> -> vector<4x8x8xbf16>
    %29 = vector.extract_strided_slice %19 {offsets = [0, 32], sizes = [8, 8], strides = [1, 1]} : vector<8x96xbf16> to vector<8x8xbf16>
    %30 = vector.extract_strided_slice %19 {offsets = [0, 40], sizes = [8, 8], strides = [1, 1]} : vector<8x96xbf16> to vector<8x8xbf16>
    %31 = vector.extract_strided_slice %19 {offsets = [0, 48], sizes = [8, 8], strides = [1, 1]} : vector<8x96xbf16> to vector<8x8xbf16>
    %32 = vector.extract_strided_slice %19 {offsets = [0, 56], sizes = [8, 8], strides = [1, 1]} : vector<8x96xbf16> to vector<8x8xbf16>
    %33 = vector.shape_cast %29 : vector<8x8xbf16> to vector<1x8x8xbf16>
    %34 = vector.shape_cast %30 : vector<8x8xbf16> to vector<1x8x8xbf16>
    %35 = vector.shape_cast %31 : vector<8x8xbf16> to vector<1x8x8xbf16>
    %36 = vector.shape_cast %32 : vector<8x8xbf16> to vector<1x8x8xbf16>
    %37 = tpu.concatenate %33, %34, %35, %36 in 0 : vector<1x8x8xbf16>, vector<1x8x8xbf16>, vector<1x8x8xbf16>, vector<1x8x8xbf16> -> vector<4x8x8xbf16>
    %38 = vector.extract_strided_slice %19 {offsets = [0, 64], sizes = [8, 8], strides = [1, 1]} : vector<8x96xbf16> to vector<8x8xbf16>
    %39 = vector.extract_strided_slice %19 {offsets = [0, 72], sizes = [8, 8], strides = [1, 1]} : vector<8x96xbf16> to vector<8x8xbf16>
    %40 = vector.extract_strided_slice %19 {offsets = [0, 80], sizes = [8, 8], strides = [1, 1]} : vector<8x96xbf16> to vector<8x8xbf16>
    %41 = vector.extract_strided_slice %19 {offsets = [0, 88], sizes = [8, 8], strides = [1, 1]} : vector<8x96xbf16> to vector<8x8xbf16>
    %42 = vector.shape_cast %38 : vector<8x8xbf16> to vector<1x8x8xbf16>
    %43 = vector.shape_cast %39 : vector<8x8xbf16> to vector<1x8x8xbf16>
    %44 = vector.shape_cast %40 : vector<8x8xbf16> to vector<1x8x8xbf16>
    %45 = vector.shape_cast %41 : vector<8x8xbf16> to vector<1x8x8xbf16>
    %46 = tpu.concatenate %42, %43, %44, %45 in 0 : vector<1x8x8xbf16>, vector<1x8x8xbf16>, vector<1x8x8xbf16>, vector<1x8x8xbf16> -> vector<4x8x8xbf16>
    %47 = vector.shape_cast %10 : vector<1x8xf32> to vector<1x1x8xf32>
    %48 = vector.shape_cast %47 : vector<1x1x8xf32> to vector<1x1x8xf32>
    %49 = vector.broadcast %48 : vector<1x1x8xf32> to vector<1x4x8xf32>
    %50 = vector.shape_cast %49 : vector<1x4x8xf32> to vector<4x8xf32>
    "tpu.trace_start"() <{level = 10 : i32, message = "nqd,nkd->nqk"}> : () -> ()
    %cst_14 = arith.constant dense<0.000000e+00> : vector<4x8x8xf32>
    %51 = tpu.matmul %28, %37, %cst_14 {dimension_numbers = #tpu.dot_dimension_numbers<[2], [2], [1], [1], [0, 0, 0, 1, 1, 1], [0], [0]>} : vector<4x8x8xbf16>, vector<4x8x8xbf16>, vector<4x8x8xf32> -> vector<4x8x8xf32>
    "tpu.trace_stop"() : () -> ()
    %cst_15 = arith.constant 0.353553385 : f32
    %52 = vector.broadcast %cst_15 : f32 to vector<4x8x8xf32>
    %53 = arith.mulf %51, %52 : vector<4x8x8xf32>
    %54 = vector.shape_cast %50 : vector<4x8xf32> to vector<4x1x8xf32>
    %55 = vector.broadcast %54 : vector<4x1x8xf32> to vector<4x8x8xf32>
    %56 = arith.addf %53, %55 : vector<4x8x8xf32>
    %cst_16 = arith.constant dense<0xFF800000> : vector<4x8xf32>
    %57 = vector.multi_reduction <maximumf>, %56, %cst_16 [2] : vector<4x8x8xf32> to vector<4x8xf32>
    %58 = vector.shape_cast %57 : vector<4x8xf32> to vector<4x8x1xf32>
    %59 = vector.broadcast %58 : vector<4x8x1xf32> to vector<4x8x8xf32>
    %60 = arith.subf %56, %59 : vector<4x8x8xf32>
    %61 = math.exp %60 : vector<4x8x8xf32>
    %cst_17 = arith.constant dense<0.000000e+00> : vector<4x8xf32>
    %62 = vector.multi_reduction <add>, %61, %cst_17 [2] : vector<4x8x8xf32> to vector<4x8xf32>
    %63 = vector.shape_cast %62 : vector<4x8xf32> to vector<4x8x1xf32>
    %64 = tpu.reciprocal %63 {approx = true} : vector<4x8x1xf32> -> vector<4x8x1xf32>
    %65 = vector.broadcast %64 : vector<4x8x1xf32> to vector<4x8x8xf32>
    %66 = arith.mulf %61, %65 : vector<4x8x8xf32>
    %67 = arith.truncf %66 : vector<4x8x8xf32> to vector<4x8x8xbf16>
    "tpu.trace_start"() <{level = 10 : i32, message = "nqk,nkd->nqd"}> : () -> ()
    %cst_18 = arith.constant dense<0.000000e+00> : vector<4x8x8xf32>
    %68 = tpu.matmul %67, %46, %cst_18 {dimension_numbers = #tpu.dot_dimension_numbers<[2], [1], [1], [2], [0, 0, 0, 1, 1, 2], [0], [0]>} : vector<4x8x8xbf16>, vector<4x8x8xbf16>, vector<4x8x8xf32> -> vector<4x8x8xf32>
    "tpu.trace_stop"() : () -> ()
    %69 = vector.extract_strided_slice %68 {offsets = [0, 0, 0], sizes = [1, 8, 8], strides = [1, 1, 1]} : vector<4x8x8xf32> to vector<1x8x8xf32>
    %70 = vector.shape_cast %69 : vector<1x8x8xf32> to vector<8x8xf32>
    %71 = vector.extract_strided_slice %68 {offsets = [1, 0, 0], sizes = [1, 8, 8], strides = [1, 1, 1]} : vector<4x8x8xf32> to vector<1x8x8xf32>
    %72 = vector.shape_cast %71 : vector<1x8x8xf32> to vector<8x8xf32>
    %73 = vector.extract_strided_slice %68 {offsets = [2, 0, 0], sizes = [1, 8, 8], strides = [1, 1, 1]} : vector<4x8x8xf32> to vector<1x8x8xf32>
    %74 = vector.shape_cast %73 : vector<1x8x8xf32> to vector<8x8xf32>
    %75 = vector.extract_strided_slice %68 {offsets = [3, 0, 0], sizes = [1, 8, 8], strides = [1, 1, 1]} : vector<4x8x8xf32> to vector<1x8x8xf32>
    %76 = vector.shape_cast %75 : vector<1x8x8xf32> to vector<8x8xf32>
    %77 = tpu.concatenate %70, %72, %74, %76 in 1 : vector<8x8xf32>, vector<8x8xf32>, vector<8x8xf32>, vector<8x8xf32> -> vector<8x32xf32>
    %78 = arith.truncf %77 : vector<8x32xf32> to vector<8x32xbf16>
    %c0_19 = arith.constant 0 : index
    %c0_20 = arith.constant 0 : index
    %c0_21 = arith.constant 0 : index
    %79 = vector.load %arg6[%c0_19, %c0_20, %c0_21] : memref<1x32x32xbf16, #tpu.memory_space<vmem>>, vector<1x32x32xbf16>
    %80 = vector.shape_cast %79 : vector<1x32x32xbf16> to vector<32x32xbf16>
    %cst_22 = arith.constant dense<0.000000e+00> : vector<8x32xf32>
    %81 = tpu.matmul %78, %80, %cst_22 {dimension_numbers = #tpu.dot_dimension_numbers<[1], [0], [0], [1], [0, 0, 1, 1], [], []>} : vector<8x32xbf16>, vector<32x32xbf16>, vector<8x32xf32> -> vector<8x32xf32>
    %c0_23 = arith.constant 0 : index
    %c0_24 = arith.constant 0 : index
    %c0_25 = arith.constant 0 : index
    %82 = vector.load %arg7[%c0_23, %c0_24, %c0_25] : memref<1x1x32xf32, #tpu.memory_space<vmem>>, vector<1x1x32xf32>
    %83 = vector.shape_cast %82 : vector<1x1x32xf32> to vector<1x32xf32>
    %84 = vector.broadcast %83 : vector<1x32xf32> to vector<8x32xf32>
    %85 = arith.addf %81, %84 : vector<8x32xf32>
    %86 = arith.addf %85, %4 : vector<8x32xf32>
    %c0_26 = arith.constant 0 : index
    %c0_27 = arith.constant 0 : index
    %c0_28 = arith.constant 0 : index
    %87 = vector.load %arg8[%c0_26, %c0_27, %c0_28] : memref<1x1x32xf32, #tpu.memory_space<vmem>>, vector<1x1x32xf32>
    %88 = vector.shape_cast %87 : vector<1x1x32xf32> to vector<1x32xf32>
    %c0_29 = arith.constant 0 : index
    %c0_30 = arith.constant 0 : index
    %c0_31 = arith.constant 0 : index
    %89 = vector.load %arg9[%c0_29, %c0_30, %c0_31] : memref<1x1x32xf32, #tpu.memory_space<vmem>>, vector<1x1x32xf32>
    %90 = vector.shape_cast %89 : vector<1x1x32xf32> to vector<1x32xf32>
    %cst_32 = arith.constant dense<0.000000e+00> : vector<8xf32>
    %91 = vector.multi_reduction <add>, %86, %cst_32 [1] : vector<8x32xf32> to vector<8xf32>
    %92 = vector.shape_cast %91 : vector<8xf32> to vector<8x1xf32>
    %cst_33 = arith.constant 3.200000e+01 : f32
    %93 = vector.broadcast %cst_33 : f32 to vector<8x1xf32>
    %94 = arith.divf %92, %93 : vector<8x1xf32>
    %95 = vector.broadcast %94 : vector<8x1xf32> to vector<8x32xf32>
    %96 = arith.subf %86, %95 : vector<8x32xf32>
    %97 = arith.mulf %96, %96 : vector<8x32xf32>
    %cst_34 = arith.constant dense<0.000000e+00> : vector<8xf32>
    %98 = vector.multi_reduction <add>, %97, %cst_34 [1] : vector<8x32xf32> to vector<8xf32>
    %99 = vector.shape_cast %98 : vector<8xf32> to vector<8x1xf32>
    %cst_35 = arith.constant 3.200000e+01 : f32
    %100 = vector.broadcast %cst_35 : f32 to vector<8x1xf32>
    %101 = arith.divf %99, %100 : vector<8x1xf32>
    %102 = vector.broadcast %94 : vector<8x1xf32> to vector<8x32xf32>
    %103 = arith.subf %86, %102 : vector<8x32xf32>
    %cst_36 = arith.constant 9.99999996E-13 : f32
    %104 = vector.broadcast %cst_36 : f32 to vector<8x1xf32>
    %105 = arith.addf %101, %104 : vector<8x1xf32>
    %106 = math.rsqrt %105 : vector<8x1xf32>
    %107 = vector.broadcast %106 : vector<8x1xf32> to vector<8x32xf32>
    %108 = arith.mulf %103, %107 : vector<8x32xf32>
    %109 = vector.broadcast %88 : vector<1x32xf32> to vector<8x32xf32>
    %110 = arith.mulf %108, %109 : vector<8x32xf32>
    %111 = vector.broadcast %90 : vector<1x32xf32> to vector<8x32xf32>
    %112 = arith.addf %110, %111 : vector<8x32xf32>
    %113 = arith.truncf %112 : vector<8x32xf32> to vector<8x32xbf16>
    %c0_37 = arith.constant 0 : index
    %c0_38 = arith.constant 0 : index
    %c0_39 = arith.constant 0 : index
    %114 = vector.load %arg10[%c0_37, %c0_38, %c0_39] : memref<1x32x64xbf16, #tpu.memory_space<vmem>>, vector<1x32x64xbf16>
    %115 = vector.shape_cast %114 : vector<1x32x64xbf16> to vector<32x64xbf16>
    %cst_40 = arith.constant dense<0.000000e+00> : vector<8x64xf32>
    %116 = tpu.matmul %113, %115, %cst_40 {dimension_numbers = #tpu.dot_dimension_numbers<[1], [0], [0], [1], [0, 0, 1, 1], [], []>} : vector<8x32xbf16>, vector<32x64xbf16>, vector<8x64xf32> -> vector<8x64xf32>
    %c0_41 = arith.constant 0 : index
    %c0_42 = arith.constant 0 : index
    %c0_43 = arith.constant 0 : index
    %117 = vector.load %arg11[%c0_41, %c0_42, %c0_43] : memref<1x1x64xf32, #tpu.memory_space<vmem>>, vector<1x1x64xf32>
    %118 = vector.shape_cast %117 : vector<1x1x64xf32> to vector<1x64xf32>
    %119 = vector.broadcast %118 : vector<1x64xf32> to vector<8x64xf32>
    %120 = arith.addf %116, %119 : vector<8x64xf32>
    %cst_44 = arith.constant 5.000000e-01 : f32
    %121 = vector.broadcast %cst_44 : f32 to vector<8x64xf32>
    %122 = arith.mulf %121, %120 : vector<8x64xf32>
    %cst_45 = arith.constant 4.471500e-02 : f32
    %123 = vector.broadcast %cst_45 : f32 to vector<8x64xf32>
    %124 = arith.mulf %123, %120 : vector<8x64xf32>
    %125 = arith.mulf %124, %120 : vector<8x64xf32>
    %126 = arith.mulf %125, %120 : vector<8x64xf32>
    %127 = arith.addf %120, %126 : vector<8x64xf32>
    %cst_46 = arith.constant 0.797884583 : f32
    %128 = vector.broadcast %cst_46 : f32 to vector<8x64xf32>
    %129 = arith.mulf %128, %127 : vector<8x64xf32>
    %130 = math.tanh %129 : vector<8x64xf32>
    %cst_47 = arith.constant 1.000000e+00 : f32
    %131 = vector.broadcast %cst_47 : f32 to vector<8x64xf32>
    %132 = arith.addf %131, %130 : vector<8x64xf32>
    %133 = arith.mulf %122, %132 : vector<8x64xf32>
    %134 = arith.truncf %133 : vector<8x64xf32> to vector<8x64xbf16>
    %c0_48 = arith.constant 0 : index
    %c0_49 = arith.constant 0 : index
    %c0_50 = arith.constant 0 : index
    %135 = vector.load %arg12[%c0_48, %c0_49, %c0_50] : memref<1x64x32xbf16, #tpu.memory_space<vmem>>, vector<1x64x32xbf16>
    %136 = vector.shape_cast %135 : vector<1x64x32xbf16> to vector<64x32xbf16>
    %cst_51 = arith.constant dense<0.000000e+00> : vector<8x32xf32>
    %137 = tpu.matmul %134, %136, %cst_51 {dimension_numbers = #tpu.dot_dimension_numbers<[1], [0], [0], [1], [0, 0, 1, 1], [], []>} : vector<8x64xbf16>, vector<64x32xbf16>, vector<8x32xf32> -> vector<8x32xf32>
    %c0_52 = arith.constant 0 : index
    %c0_53 = arith.constant 0 : index
    %c0_54 = arith.constant 0 : index
    %138 = vector.load %arg13[%c0_52, %c0_53, %c0_54] : memref<1x1x32xf32, #tpu.memory_space<vmem>>, vector<1x1x32xf32>
    %139 = vector.shape_cast %138 : vector<1x1x32xf32> to vector<1x32xf32>
    %140 = vector.broadcast %139 : vector<1x32xf32> to vector<8x32xf32>
    %141 = arith.addf %137, %140 : vector<8x32xf32>
    %142 = arith.addf %141, %112 : vector<8x32xf32>
    %c0_55 = arith.constant 0 : index
    %c0_56 = arith.constant 0 : index
    %c0_57 = arith.constant 0 : index
    %143 = vector.load %arg14[%c0_55, %c0_56, %c0_57] : memref<1x1x32xf32, #tpu.memory_space<vmem>>, vector<1x1x32xf32>
    %144 = vector.shape_cast %143 : vector<1x1x32xf32> to vector<1x32xf32>
    %c0_58 = arith.constant 0 : index
    %c0_59 = arith.constant 0 : index
    %c0_60 = arith.constant 0 : index
    %145 = vector.load %arg15[%c0_58, %c0_59, %c0_60] : memref<1x1x32xf32, #tpu.memory_space<vmem>>, vector<1x1x32xf32>
    %146 = vector.shape_cast %145 : vector<1x1x32xf32> to vector<1x32xf32>
    %cst_61 = arith.constant dense<0.000000e+00> : vector<8xf32>
    %147 = vector.multi_reduction <add>, %142, %cst_61 [1] : vector<8x32xf32> to vector<8xf32>
    %148 = vector.shape_cast %147 : vector<8xf32> to vector<8x1xf32>
    %cst_62 = arith.constant 3.200000e+01 : f32
    %149 = vector.broadcast %cst_62 : f32 to vector<8x1xf32>
    %150 = arith.divf %148, %149 : vector<8x1xf32>
    %151 = vector.broadcast %150 : vector<8x1xf32> to vector<8x32xf32>
    %152 = arith.subf %142, %151 : vector<8x32xf32>
    %153 = arith.mulf %152, %152 : vector<8x32xf32>
    %cst_63 = arith.constant dense<0.000000e+00> : vector<8xf32>
    %154 = vector.multi_reduction <add>, %153, %cst_63 [1] : vector<8x32xf32> to vector<8xf32>
    %155 = vector.shape_cast %154 : vector<8xf32> to vector<8x1xf32>
    %cst_64 = arith.constant 3.200000e+01 : f32
    %156 = vector.broadcast %cst_64 : f32 to vector<8x1xf32>
    %157 = arith.divf %155, %156 : vector<8x1xf32>
    %158 = vector.broadcast %150 : vector<8x1xf32> to vector<8x32xf32>
    %159 = arith.subf %142, %158 : vector<8x32xf32>
    %cst_65 = arith.constant 9.99999996E-13 : f32
    %160 = vector.broadcast %cst_65 : f32 to vector<8x1xf32>
    %161 = arith.addf %157, %160 : vector<8x1xf32>
    %162 = math.rsqrt %161 : vector<8x1xf32>
    %163 = vector.broadcast %162 : vector<8x1xf32> to vector<8x32xf32>
    %164 = arith.mulf %159, %163 : vector<8x32xf32>
    %165 = vector.broadcast %144 : vector<1x32xf32> to vector<8x32xf32>
    %166 = arith.mulf %164, %165 : vector<8x32xf32>
    %167 = vector.broadcast %146 : vector<1x32xf32> to vector<8x32xf32>
    %168 = arith.addf %166, %167 : vector<8x32xf32>
    %169 = vector.shape_cast %168 : vector<8x32xf32> to vector<1x8x32xf32>
    %c0_66 = arith.constant 0 : index
    %c0_67 = arith.constant 0 : index
    %c0_68 = arith.constant 0 : index
    %170 = vector.load %arg16[%c0_66, %c0_67, %c0_68] : memref<1x8x32xf32, #tpu.memory_space<vmem>>, vector<1x8x32xf32>
    tpu.vector_store %arg16[%c0_66, %c0_67, %c0_68], %169 {strides = array<i32>} : memref<1x8x32xf32, #tpu.memory_space<vmem>>, vector<1x8x32xf32>,
    return
  }
  func.func @transform_0(%arg0: i32, %arg1: i32) -> (i32, i32, i32) {
    %c0_i32 = arith.constant 0 : i32
    %c0_i32_0 = arith.constant 0 : i32
    %c0_i32_1 = arith.constant 0 : i32
    return %arg0, %c0_i32, %c0_i32_0 : i32, i32, i32
  }
  func.func @transform_1(%arg0: i32, %arg1: i32) -> (i32, i32, i32) {
    %c0_i32 = arith.constant 0 : i32
    %c0_i32_0 = arith.constant 0 : i32
    %c0_i32_1 = arith.constant 0 : i32
    return %arg0, %c0_i32, %c0_i32_0 : i32, i32, i32
  }
  func.func @transform_2(%arg0: i32, %arg1: i32) -> (i32, i32, i32) {
    %c0_i32 = arith.constant 0 : i32
    %c0_i32_0 = arith.constant 0 : i32
    %c0_i32_1 = arith.constant 0 : i32
    return %arg1, %c0_i32, %c0_i32_0 : i32, i32, i32
  }
  func.func @transform_3(%arg0: i32, %arg1: i32) -> (i32, i32, i32) {
    %c0_i32 = arith.constant 0 : i32
    %c0_i32_0 = arith.constant 0 : i32
    %c0_i32_1 = arith.constant 0 : i32
    return %arg1, %c0_i32, %c0_i32_0 : i32, i32, i32
  }
  func.func @transform_4(%arg0: i32, %arg1: i32) -> (i32, i32, i32) {
    %c0_i32 = arith.constant 0 : i32
    %c0_i32_0 = arith.constant 0 : i32
    %c0_i32_1 = arith.constant 0 : i32
    return %arg1, %c0_i32, %c0_i32_0 : i32, i32, i32
  }
  func.func @transform_5(%arg0: i32, %arg1: i32) -> (i32, i32, i32) {
    %c0_i32 = arith.constant 0 : i32
    %c0_i32_0 = arith.constant 0 : i32
    %c0_i32_1 = arith.constant 0 : i32
    return %arg1, %c0_i32, %c0_i32_0 : i32, i32, i32
  }
  func.func @transform_6(%arg0: i32, %arg1: i32) -> (i32, i32, i32) {
    %c0_i32 = arith.constant 0 : i32
    %c0_i32_0 = arith.constant 0 : i32
    %c0_i32_1 = arith.constant 0 : i32
    return %arg1, %c0_i32, %c0_i32_0 : i32, i32, i32
  }
  func.func @transform_7(%arg0: i32, %arg1: i32) -> (i32, i32, i32) {
    %c0_i32 = arith.constant 0 : i32
    %c0_i32_0 = arith.constant 0 : i32
    %c0_i32_1 = arith.constant 0 : i32
    return %arg1, %c0_i32, %c0_i32_0 : i32, i32, i32
  }
  func.func @transform_8(%arg0: i32, %arg1: i32) -> (i32, i32, i32) {
    %c0_i32 = arith.constant 0 : i32
    %c0_i32_0 = arith.constant 0 : i32
    %c0_i32_1 = arith.constant 0 : i32
    return %arg1, %c0_i32, %c0_i32_0 : i32, i32, i32
  }
  func.func @transform_9(%arg0: i32, %arg1: i32) -> (i32, i32, i32) {
    %c0_i32 = arith.constant 0 : i32
    %c0_i32_0 = arith.constant 0 : i32
    %c0_i32_1 = arith.constant 0 : i32
    return %arg1, %c0_i32, %c0_i32_0 : i32, i32, i32
  }
  func.func @transform_10(%arg0: i32, %arg1: i32) -> (i32, i32, i32) {
    %c0_i32 = arith.constant 0 : i32
    %c0_i32_0 = arith.constant 0 : i32
    %c0_i32_1 = arith.constant 0 : i32
    return %arg1, %c0_i32, %c0_i32_0 : i32, i32, i32
  }
  func.func @transform_11(%arg0: i32, %arg1: i32) -> (i32, i32, i32) {
    %c0_i32 = arith.constant 0 : i32
    %c0_i32_0 = arith.constant 0 : i32
    %c0_i32_1 = arith.constant 0 : i32
    return %arg1, %c0_i32, %c0_i32_0 : i32, i32, i32
  }
  func.func @transform_12(%arg0: i32, %arg1: i32) -> (i32, i32, i32) {
    %c0_i32 = arith.constant 0 : i32
    %c0_i32_0 = arith.constant 0 : i32
    %c0_i32_1 = arith.constant 0 : i32
    return %arg1, %c0_i32, %c0_i32_0 : i32, i32, i32
  }
  func.func @transform_13(%arg0: i32, %arg1: i32) -> (i32, i32, i32) {
    %c0_i32 = arith.constant 0 : i32
    %c0_i32_0 = arith.constant 0 : i32
    %c0_i32_1 = arith.constant 0 : i32
    return %arg1, %c0_i32, %c0_i32_0 : i32, i32, i32
  }
  func.func @transform_14(%arg0: i32, %arg1: i32) -> (i32, i32, i32) {
    %c0_i32 = arith.constant 0 : i32
    %c0_i32_0 = arith.constant 0 : i32
    %c0_i32_1 = arith.constant 0 : i32
    return %arg0, %c0_i32, %c0_i32_0 : i32, i32, i32
  }
}

</mosaic_0001>

<bundles_post_ra>
// kernel: tpu_custom_call.1
= control target key start
LH: loop header
LB: loop body
LE: loop exit
PB: predicated region body
PF: predicated region fallthrough
CT: control target
= control target key end

     0   :  { %s2916_s0 = inlined_call_operand.hbm [shape: f32[2,8,32], index: 0, kind: input, shape index: {}]   ;;  %s2917_s1 = inlined_call_operand.hbm [shape: f32[2,1,8], index: 1, kind: input, shape index: {}]   ;;  %s2918_s2 = inlined_call_operand.vmem [shape: bf16[6,32,96], index: 2, kind: input, shape index: {}]   ;;  %s2919_s3 = inlined_call_operand.hbm [shape: f32[6,1,96], index: 3, kind: input, shape index: {}]   ;;  %s2920_s4 = inlined_call_operand.vmem [shape: bf16[6,32,32], index: 4, kind: input, shape index: {}]   ;;  %s2921_s5 = inlined_call_operand.hbm [shape: f32[6,1,32], index: 5, kind: input, shape index: {}]   ;;  %s2922_s6 = inlined_call_operand.hbm [shape: f32[6,1,32], index: 6, kind: input, shape index: {}]   ;;  %s2923_s7 = inlined_call_operand.hbm [shape: f32[6,1,32], index: 7, kind: input, shape index: {}]   ;;  %s2924_s8 = inlined_call_operand.vmem [shape: bf16[6,32,64], index: 8, kind: input, shape index: {}]   ;;  %s2925_s9 = inlined_call_operand.vmem [shape: f32[6,1,64], index: 9, kind: input, shape index: {}]   ;;  %s2926_s10 = inlined_call_operand.vmem [shape: bf16[6,64,32], index: 10, kind: input, shape index: {}]   ;;  %s2927_s11 = inlined_call_operand.hbm [shape: f32[6,1,32], index: 11, kind: input, shape index: {}]   ;;  %s2928_s12 = inlined_call_operand.hbm [shape: f32[6,1,32], index: 12, kind: input, shape index: {}]   ;;  %s2929_s13 = inlined_call_operand.hbm [shape: f32[6,1,32], index: 13, kind: input, shape index: {}]   ;;  %s2930_s14 = inlined_call_operand.hbm [shape: f32[2,8,32], index: 14, kind: output, shape index: {}]  }
   0x1   :  { %2951 = sst [smem:[#allocation38_spill]] %s2916_s0 }
   0x2   :  { %2952 = sst [smem:[#allocation39_spill]] %s2917_s1 }
   0x3   :  { %2953 = sst [smem:[#allocation40_spill]] %s2918_s2 }
   0x4   :  { %2954 = sst [smem:[#allocation41_spill]] %s2919_s3 }
   0x5   :  { %2955 = sst [smem:[#allocation42_spill]] %s2920_s4 }
   0x6   :  { %2956 = sst [smem:[#allocation43_spill]] %s2921_s5 }
   0x7   :  { %2957 = sst [smem:[#allocation44_spill]] %s2922_s6 }
   0x8   :  { %2958 = sst [smem:[#allocation45_spill]] %s2923_s7 }
   0x9   :  { %2959 = sst [smem:[#allocation46_spill]] %s2924_s8 }
   0xa   :  { %2960 = sst [smem:[#allocation47_spill]] %s2925_s9 }
   0xb   :  { %2961 = sst [smem:[#allocation48_spill]] %s2926_s10 }
   0xc   :  { %2962 = sst [smem:[#allocation49_spill]] %s2927_s11 }
   0xd   :  { %2963 = sst [smem:[#allocation50_spill]] %s2928_s12 }
   0xe   :  { %2964 = sst [smem:[#allocation51_spill]] %s2930_s14 }
   0xf   :  { %19 = vsyncpa [#allocation3], 0 }
  0x10   :  { %21 = vsyncpa [#allocation3 + $0x1], 0 }
  0x11   :  { %22 = vsyncpa [#allocation6], 0 }
  0x12   :  { %24 = vsyncpa [#allocation6 + $0x1], 0 }
  0x13   :  { %25 = vsyncpa [#allocation9], 0 }
  0x14   :  { %27 = vsyncpa [#allocation9 + $0x1], 0 }
  0x15   :  { %28 = vsyncpa [#allocation12], 0 }
  0x16   :  { %30 = vsyncpa [#allocation12 + $0x1], 0 }
  0x17   :  { %31 = vsyncpa [#allocation15], 0 }
  0x18   :  { %33 = vsyncpa [#allocation15 + $0x1], 0 }
  0x19   :  { %34 = vsyncpa [#allocation4], 0 }
  0x1a   :  { %36 = vsyncpa [#allocation4 + $0x1], 0  ;;  %s2445_s29 = smov 0   ;;  %s2447_s30 = smov 0  }
  0x1b   :  { %s2449_s15 = smov 0   ;;  %s2451_s16 = smov 0  }
  0x1c   :  { %s2453_s17 = smov 0   ;;  %s2455_s18 = smov 0  }
  0x1d   :  { %s2457_s19 = smov 0   ;;  %s2459_s20 = smov 0  }
  0x1e   :  { %s2461_s21 = smov 0   ;;  %s2463_s22 = smov 0  }
  0x1f   :  { %s2465_s23 = smov 0  }
  0x20 LB: > { %2965 = sst [smem:[#allocation25_spill]] %s2327_s15  ;;  %s2501_s24 = sadd.s32 4294967295, %s2359_s23   ;;  %s2359_s23 = sphi %s2465_s23, %s42_s23   ;;  %s2355_s22 = sphi %s2463_s22, %s3036_s22   ;;  %s2351_s21 = sphi %s2461_s21, %s3035_s21   ;;  %s2347_s20 = sphi %s2459_s20, %s3034_s20   ;;  %s2343_s19 = sphi %s2457_s19, %s3033_s19   ;;  %s2339_s18 = sphi %s2455_s18, %s3032_s18   ;;  %s2335_s17 = sphi %s2453_s17, %s3031_s17   ;;  %s2331_s16 = sphi %s2451_s16, %s3030_s16   ;;  %s2327_s15 = sphi %s2449_s15, %s3023_s15   ;;  %s2323_s30 = sphi %s2447_s30, %s3029_s30   ;;  %s2319_s29 = sphi %s2445_s29, %s3028_s29  }
  0x21   : > { %2966 = sst [smem:[#allocation26_spill]] %s2331_s16  ;;  %s1677_s25 = sadd.s32 4294967294, %s2359_s23  }
  0x22   : > { %2967 = sst [smem:[#allocation27_spill]] %s2339_s18  ;;  %s51_s26 = sadd.s32 1, %s2351_s21 }
  0x23   : > { %2968 = sst [smem:[#allocation28_spill]] %s2343_s19  ;;  %s54_s27 = sadd.s32 1, %s2355_s22 }
  0x24   : > { %2969 = sst [smem:[#allocation29_spill]] %s2347_s20  ;;  %p52_p0 = scmp.ge.s32.totalorder %s51_s26, 6 }
  0x25   : > { %2970 = sst [smem:[#allocation30_spill]] %s2359_s23  ;;  %s61_s28 = sadd.s32 1, %s2339_s18 }
  0x26   : > { %p68_p1 = scmp.ne.s32.totalorder %s2339_s18, %s2335_s17  ;;  %p69_p2 = scmp.eq.s32.totalorder %s2359_s23, 0 }
  0x27   : > { %s3038_s26 = smov (%p52_p0, %s51_s26), 0  ;;  %s3040_s27 = smov (!%p52_p0, %s54_s27), %s2355_s22 }
  0x28   : > { %2971 = sst [smem:[#allocation31_spill]] %s3038_s26  ;;  %p2518_p3 = por %p69_p2, %p68_p1 }
  0x29   : > { %p2934_p4 = scmp.ne.s32.totalorder %s2335_s17, %s2331_s16  ;;  %p56_p5 = scmp.ge.s32.totalorder %s3040_s27, 2 }
  0x2a   : > { %p75_p6 = scmp.eq.s32.totalorder %s2501_s24, 0  ;;  %s136_s20 = ssub.s32 %s2351_s21, %s3038_s26 }
  0x2b   : > { %s139_s10 = sadd.s32 1, %s2327_s15  ;;  %s3042_s27 = smov (%p56_p5, %s3040_s27), 0 }
  0x2c   : > { %2973 = sst [smem:[#allocation32_spill]] %s3042_s27  ;;  %p2535_p7 = por %p75_p6, %p2934_p4 }
  0x2d   : > { %p137_p8 = scmp.eq.s32.totalorder %s136_s20, 0  ;;  %s58_s4 = ssub.s32 %s2355_s22, %s3042_s27 }
  0x2e   : > { %p146_p9 = scmp.ne.s32.totalorder %s2327_s15, %s2323_s30  ;;  %p59_p10 = scmp.eq.s32.totalorder %s58_s4, 0 }
  0x2f   : > { %p152_p11 = scmp.ne.s32.totalorder %s2323_s30, %s2319_s29  ;;  %p436_p0 = scmp.eq.s32.totalorder %s2501_s24, 11 }
  0x30   : > { %s2546_s26 = scalar_select %p137_p8, %s2327_s15, %s139_s10  }
  0x31   : > { %s2549_s2 = scalar_select %p59_p10, %s2339_s18, %s61_s28  }
  0x32   : > { %2975 = sst [smem:[#allocation33_spill]] %s2546_s26  ;;  %p2553_p12 = por %p146_p9, %p69_p2 }
  0x33   : > { %2976 = sst [smem:[#allocation34_spill]] %s2549_s2  ;;  %p2559_p13 = por %p152_p11, %p75_p6 }
  0x34   : > { %p442_p5 = scmp.eq.s32.totalorder %s1677_s25, 11  ;;  %p1816_p4 = scmp.lt.s32.totalorder %s2359_s23, 12 }
  0x35   : > { %s2978_s19 = scalar_select %p2559_p13, 1, 0 }
  0x36   : > { %p2568_p8 = por %p436_p0, %p68_p1  ;;  %p2982_p2 = scmp.ne.s32.totalorder %s2335_s17, %s2331_s16 }
  0x37   : > { %2979 = sst [smem:[#allocation35_spill]] %s2978_s19  ;;  %s2580_s29 = sand.u32 1, %s2339_s18  }
  0x38   : > { %s2980_s4 = scalar_select %p2568_p8, 1, 0 }
  0x39   : > { %p2575_p9 = por %p442_p5, %p2982_p2  ;;  %p2584_p6 = pnand %p1816_p4, %p2518_p3 }
  0x3a   : > { %2981 = sst [smem:[#allocation36_spill]] %s2980_s4  ;;  %s2589_s25 = sand.u32 1, %s2359_s23  }
  0x3b   : > { %s2983_s10 = scalar_select %p2575_p9, 1, 0 }
  0x3c   : > { %s2986_s1 = sld [smem:[#allocation39_spill]]  ;;  %s484_s26 = scalar_lea.vmem [#allocation5], %s2580_s29 }
  0x3d   : > { %2984 = sst [smem:[#allocation37_spill]] %s2983_s10  ;;  %s491_s10 = sshll.u32 %s484_s26, 4  ;;  %s492_s10 = int_to_ptr.vmem [resolvable:$true] %s491_s10 }
  0x3e   : > { %p2598_p1 = pnand %p1816_p4, %p2553_p12  ;;  %s2939_s16 = scalar_lea.sflag [#allocation6], %s2589_s25 }
  0x3f   : > { %p1682_p3 = scmp.ge.s32.totalorder %s2359_s23, 1  ;;  %p653_p10 = scmp.lt.s32.totalorder %s2359_s23, 13 }
  0x40   : > { %s2610_s27 = sand.u32 1, %s2327_s15   ;;  %s2989_s5 = sld [smem:[#allocation43_spill]] }
  0x41   : > { %p2612_p11 = pnand %p1682_p3, %p653_p10  ;;  %s2990_s7 = sld [smem:[#allocation45_spill]] }
  0x42   : > { %s487_s2 = scalar_lea.hbm %s2986_s1, %s2355_s22  ;;  %s568_s26 = scalar_lea.vmem [#allocation11], %s2610_s27 }
  0x43   : > { %s489_s18 = sshll.u32 %s487_s2, 4  ;;  %s2991_s12 = sld [smem:[#allocation50_spill]]  ;;  %s490_s18 = int_to_ptr.hbm [resolvable:$true] %s489_s18 }
  0x44   : > { %1790 = dma.hbm_to_vmem [thread:$0]  (!%p2584_p6), %s490_s18, 16, %s492_s10, %s2939_s16  }
  0x45   : > { %s534_s18 = scalar_lea.vmem [#allocation8], %s2610_s27  ;;  %s2948_s16 = scalar_lea.sflag [#allocation9], %s2589_s25 }
  0x46   : > { %s537_s28 = scalar_lea.hbm %s2989_s5, %s2351_s21  ;;  %s541_s10 = sshll.u32 %s534_s18, 4  ;;  %s542_s10 = int_to_ptr.vmem [resolvable:$true] %s541_s10 }
  0x47   : > { %s539_s1 = sshll.u32 %s537_s28, 4  ;;  %s571_s9 = scalar_lea.hbm %s2990_s7, %s2351_s21  ;;  %s540_s1 = int_to_ptr.hbm [resolvable:$true] %s539_s1 }
  0x48   : > { %1796 = dma.hbm_to_vmem [thread:$0]  (!%p2598_p1), %s540_s1, 16, %s542_s10, %s2948_s16  }
  0x49   : > { %s575_s28 = sshll.u32 %s568_s26, 4  ;;  %s573_s5 = sshll.u32 %s571_s9, 4  ;;  %s576_s28 = int_to_ptr.vmem [resolvable:$true] %s575_s28  ;;  %s574_s5 = int_to_ptr.hbm [resolvable:$true] %s573_s5 }
  0x4a   : > { %s2947_s18 = scalar_lea.sflag [#allocation12], %s2589_s25  ;;  %s627_s1 = scalar_lea.hbm %s2991_s12, %s2351_s21 }
  0x4b   : > { %1802 = dma.hbm_to_vmem [thread:$0]  (!%p2598_p1), %s574_s5, 16, %s576_s28, %s2947_s18  }
  0x4c   : > { %s629_s15 = sshll.u32 %s627_s1, 4  ;;  %s624_s23 = scalar_lea.vmem [#allocation14], %s2610_s27  ;;  %s630_s15 = int_to_ptr.hbm [resolvable:$true] %s629_s15 }
  0x4d   : > { %s631_s10 = sshll.u32 %s624_s23, 4  ;;  %s2949_s9 = scalar_lea.sflag [#allocation15], %s2589_s25  ;;  %s632_s10 = int_to_ptr.vmem [resolvable:$true] %s631_s10 }
  0x4e   : > { %1808 = dma.hbm_to_vmem [thread:$0]  (!%p2598_p1), %s630_s15, 16, %s632_s10, %s2949_s9  }
  0x4f   : > { %s1680_s26 = sshll.u32 %s2580_s29, 3  ;;  %s1681_s5 = sshll.u32 %s2355_s22, 3 }
  0x50   : > { %s2992_s0 = sld [smem:[#allocation38_spill]]  ;;  %s466_s1 = scalar_lea.vmem [#allocation2], %s1680_s26 }
  0x51   : > { %s474_s18 = sshll.u32 %s466_s1, 4  ;;  %s463_s16 = scalar_lea.sflag [#allocation3], %s2580_s29  ;;  %s475_s18 = int_to_ptr.vmem [resolvable:$true] %s474_s18 }
  0x52   : > { %s2993_s3 = sld [smem:[#allocation41_spill]]  ;;  %s509_s28 = scalar_lea.vmem [#allocation7], %s2610_s27 }
  0x53   : > { %s516_s19 = sshll.u32 %s509_s28, 4  ;;  %s2994_s26 = scalar_lea.sflag [#allocation6], %s2589_s25  ;;  %s517_s19 = int_to_ptr.vmem [resolvable:$true] %s516_s19 }
  0x54   : > { %s2995_s6 = sld [smem:[#allocation44_spill]]  ;;  %s607_s28 = scalar_lea.vmem [#allocation13], %s2610_s27 }
  0x55   : > { %s2997_s11 = sld [smem:[#allocation49_spill]] }
  0x56   : > { %s470_s4 = scalar_lea.hbm %s2992_s0, %s1681_s5 }
  0x57   : > { %s472_s23 = sshll.u32 %s470_s4, 4  ;;  %s473_s23 = int_to_ptr.hbm [resolvable:$true] %s472_s23 }
  0x58   : > { %1787 = dma.hbm_to_vmem [thread:$0]  (!%p2584_p6), %s473_s23, 128, %s475_s18, %s463_s16  }
  0x59   : > { %s512_s9 = scalar_lea.hbm %s2993_s3, %s2351_s21  ;;  %s551_s18 = scalar_lea.vmem [#allocation10], %s2610_s27 }
  0x5a   : > { %s514_s5 = sshll.u32 %s512_s9, 4  ;;  %s554_s16 = scalar_lea.hbm %s2995_s6, %s2351_s21  ;;  %s515_s5 = int_to_ptr.hbm [resolvable:$true] %s514_s5 }
  0x5b   : > { %1793 = dma.hbm_to_vmem [thread:$0]  (!%p2598_p1), %s515_s5, 16, %s517_s19, %s2994_s26  }
  0x5c   : > { %s558_s4 = sshll.u32 %s551_s18, 4  ;;  %s556_s1 = sshll.u32 %s554_s16, 4  ;;  %s559_s4 = int_to_ptr.vmem [resolvable:$true] %s558_s4  ;;  %s557_s1 = int_to_ptr.hbm [resolvable:$true] %s556_s1 }
  0x5d   : > { %s2996_s9 = scalar_lea.sflag [#allocation9], %s2589_s25  ;;  %s610_s10 = scalar_lea.hbm %s2997_s11, %s2351_s21 }
  0x5e   : > { %1799 = dma.hbm_to_vmem [thread:$0]  (!%p2598_p1), %s557_s1, 16, %s559_s4, %s2996_s9  }
  0x5f   : > { %s614_s19 = sshll.u32 %s607_s28, 4  ;;  %s612_s5 = sshll.u32 %s610_s10, 4  ;;  %s615_s19 = int_to_ptr.vmem [resolvable:$true] %s614_s19  ;;  %s613_s5 = int_to_ptr.hbm [resolvable:$true] %s612_s5 }
  0x60   : > { %s2998_s26 = scalar_lea.sflag [#allocation12], %s2589_s25  ;;  %s644_s16 = scalar_lea.hbm %s2929_s13, %s2351_s21 }
  0x61   : > { %1805 = dma.hbm_to_vmem [thread:$0]  (!%p2598_p1), %s613_s5, 16, %s615_s19, %s2998_s26  }
  0x62   : > { %s641_s18 = scalar_lea.vmem [#allocation16], %s2610_s27  ;;  %s646_s3 = sshll.u32 %s644_s16, 4  ;;  %s647_s3 = int_to_ptr.hbm [resolvable:$true] %s646_s3 }
  0x63   : > { %s648_s0 = sshll.u32 %s641_s18, 4  ;;  %s2999_s4 = scalar_lea.sflag [#allocation15], %s2589_s25  ;;  %s649_s0 = int_to_ptr.vmem [resolvable:$true] %s648_s0 }
  0x64   : > { %1811 = dma.hbm_to_vmem [thread:$0]  (!%p2598_p1), %s647_s3, 16, %s649_s0, %s2999_s4  }
  0x65   : > { %657 = sbr.rel (%p2612_p11) target bundleno = 2127 (0x84f), region = 76  ;;  %s2693_s1 = sand.u32 (!%p2612_p11), 1, %s2335_s17  }
  0x66   : > { %s2950_s9 = sshll.u32 (!%p2612_p11), %s2693_s1, 3  ;;  %s660_s23 = scalar_lea.sflag (!%p2612_p11), [#allocation3], %s2693_s1 }
  0x67   : > { %s2699_s27 = scalar_lea.vmem (!%p2612_p11), [#allocation2], %s2950_s9 }
  0x6a   : > { %2290 = dma.done.wait (%p2535_p7), %s660_s23, 128  }
  0x6b   : > { %2292 = vsyncadd (%p2535_p7), %s660_s23, 4294967168  ;;  %s669_s0 = sand.u32 1, %s2501_s24  }
  0x6c   : > { %s670_s3 = scalar_lea.sflag [#allocation6], %s669_s0 }
  0x6d   : > { %2294 = dma.done.wait (%p2535_p7), %s670_s3, 16  }
  0x6e   : > { %2296 = vsyncadd (%p2535_p7), %s670_s3, 4294967280  ;;  %s2712_s2 = sand.u32 1, %s2323_s30  }
  0x6f   : > { %2298 = dma.done.wait (%p2559_p13), %s670_s3, 16  }
  0x70   : > { %2300 = vsyncadd (%p2559_p13), %s670_s3, 4294967280  ;;  %s688_s24 = scalar_lea.sflag [#allocation9], %s669_s0 }
  0x71   : > { %2302 = dma.done.wait (%p2559_p13), %s688_s24, 32  }
  0x72   : > { %2304 = vsyncadd (%p2559_p13), %s688_s24, 4294967264  ;;  %s706_s28 = scalar_lea.sflag [#allocation12], %s669_s0 }
  0x73   : > { %2306 = dma.done.wait (%p2559_p13), %s706_s28, 32  }
  0x74   : > { %2308 = vsyncadd (%p2559_p13), %s706_s28, 4294967264  ;;  %s724_s26 = scalar_lea.sflag [#allocation15], %s669_s0 }
  0x75   : > { %2310 = dma.done.wait (%p2559_p13), %s724_s26, 32  }
  0x76   : > { %2312 = vsyncadd (%p2559_p13), %s724_s26, 4294967264  ;;  %s3001_s20 = sld [smem:[#allocation28_spill]]  ;;  %s735_s23 = scalar_lea.vmem [#allocation16], %s2712_s2 }
  0x77   : > { %s3002_s0 = sld [smem:[#allocation47_spill]] }
  0x78   : > { %s3003_s29 = sld [smem:[#allocation40_spill]] }
  0x79   : > { %s3004_s19 = sld [smem:[#allocation42_spill]] }
  0x7a   : > { %s3005_s15 = sld [smem:[#allocation46_spill]] }
  0x7b   : > { %s3006_s12 = sld [smem:[#allocation48_spill]] }
  0x7c   : > { %p836_p4 = scmp.lt.s32.totalorder %s3001_s20, 5  ;;  %p1693_p7 = scmp.ne.s32.totalorder %s3001_s20, 0 }
  0x7e   : > { %s2738_s16 = scalar_select %p836_p4, %s3001_s20, 5 }
  0x80   : > { %s1750_s18 = sshll.u32 %s2738_s16, 4  ;;  %s853_s3 = scalar_lea.vmem %s3002_s0, %s2738_s16 }
  0x81   : > { %s840_s14 = scalar_lea.vmem %s3003_s29, %s1750_s18  ;;  %s2751_s8 = scalar_lea.vmem %s3004_s19, %s1750_s18 }
  0x82   : > { %s2756_s9 = scalar_lea.vmem %s3005_s15, %s1750_s18  ;;  %s1753_s6 = sshll.u32 %s2738_s16, 5 }
  0x83   : > { %s2762_s4 = scalar_lea.vmem %s3006_s12, %s1753_s6  ;;  %s3007_s0 = sshll.u32 %s2693_s1, 3 }
  0x84   : > { %s2767_s24 = scalar_lea.vmem [#allocation17], %s3007_s0  ;;  %863 = sbr.rel (%p1693_p7) target bundleno = 139 (0x8b), region = 116 }
  0x89   : > { %v864_v0 = vld [vmem:[%s2699_s27] sm:$0xff]  ;;  %vm865_vm0 = vcmask 261120  }
  0x8a   : > { %866 = vst.msk [vmem:[%s2767_s24] sm:$0xff] %vm865_vm0, %v864_v0 }
  0x8b PF: > { %v1755_v1 = vld [vmem:[%s840_s14 + $0x8] sm:$0xff]  ;;  %v1754_v2 = vld [vmem:[%s840_s14] sm:$0xff]  ;;  %vm892_vm1 = vcmask 261120   ;;  %s3008_s6 = scalar_lea.vmem [#allocation7], %s2712_s2  ;;  %s2361_s7 = smov 104   ;;  %vm921_vm2 = vcmask 64512  }
  0x8c   : > { %902 = vmatpush.bf16.msra.mxu0 %v1755_v1  ;;  %v1915_v5 = vld [vmem:[%s3008_s6] ss:$0 sm:$0xff]  ;;  %s2362_s11 = smov 120   ;;  %s2363_s12 = smov 112   ;;  %vm1074_vm3 = vcmask 1043456   ;;  %vm1167_vm4 = vcmask 130048  }
  0x8d   : > { %s2364_s27 = smov 96   ;;  %s3009_s25 = scalar_lea.vmem [#allocation5], %s2693_s1  ;;  %vm1169_vm5 = vcmask 195584   ;;  %vm1331_vm10 = vcmask 523264  }
  0x8e   : > { %v868_v31 = vld [vmem:[%s3009_s25] sm:$0x1]  ;;  %s2365_s15 = smov 64   ;;  %s2366_s10 = smov 16  }
  0x8f   : > { %v869_v32 = vsub.f32 1.0, %v868_v31  ;;  %s2367_s19 = smov 8   ;;  %s2368_s5 = smov 24  }
  0x90   : > { %903 = vmatpush.bf16.msra.mxu0 %v1754_v2  ;;  %s3010_s29 = scalar_lea.vmem [#allocation8], %s2712_s2  ;;  %s3014_s14 = scalar_lea.vmem [#allocation13], %s2712_s2 }
  0x91   : > { %v2773_v3 = vld [vmem:[%s2767_s24] sm:$0xff]  ;;  %v870_v33 = vmul.f32 -10000.0, %v869_v32  ;;  %s3015_s16 = sld [smem:[#allocation29_spill]]  ;;  %s3016_s26 = scalar_lea.vmem [#allocation14], %s2712_s2 }
  0x92   : > { %v871_v4 = vpack.c.bf16 %v2773_v3, %v2773_v3  ;;  %s3017_s6 = sld [smem:[#allocation51_spill]]  ;;  %s1383_s25 = scalar_lea.sflag [#allocation4], %s2693_s1 }
  0x93   : > { %v1015_v36 = vperm.slane %v870_v33, 0 }
  0x94   : > { %1702 = vmatmul.msk.bf16.vlgmr.msra.gmra.mxu0 %vm892_vm1, %v871_v4 }
 0x111   : > { %v905_v6 = vpop.f32.mrf.mxu0 }
 0x112   : > { %v906_v7 = vadd.f32 %v1915_v5, %v905_v6 }
 0x114   : > { %v909_v8 = vpack.c.bf16 %v906_v7, %v906_v7 }
 0x116   : > { %915 = vrot.lane.b32.xlu1 %v909_v8, %s2361_s7  ;;  %911 = vrot.lane.b32.xlu0 %v909_v8, %s2362_s11  ;;  %v917_v10 = vunpack.c.l.b16 %v909_v8 }
 0x118   : > { %v2780_v11 = vpack.c.b16 %v917_v10, %v917_v10 }
 0x119   : > { %v907_v9 = vpop.f32.mrf.mxu0 }
 0x11e   : > { %913 = vrot.lane.b32.xlu0 %v909_v8, %s2363_s12  ;;  %s1395_s12 = sshll.u32 %s2767_s24, 4  ;;  %s1396_s12 = int_to_ptr.vmem [resolvable:$true] %s1395_s12 }
 0x126   : > { %919 = vrot.lane.b32.xlu0 %v2780_v11, %s2364_s27 }
 0x188   : > { %v912_v12 = vpop.permute.xlu0 %911  ;;  %v916_v18 = vpop.permute.xlu1 %915 }
 0x189   : > { %v941_v13 = vunpack.c.l.b16 %v912_v12  ;;  %v987_v19 = vunpack.c.l.b16 %v916_v18 }
 0x18b   : > { %v2783_v14 = vpack.c.b16 %v941_v13, %v941_v13  ;;  %v2790_v22 = vpack.c.b16 %v987_v19, %v987_v19 }
 0x18d   : > { %943 = vrot.lane.b32.xlu1 %v2783_v14, %s2364_s27 }
 0x190   : > { %v914_v15 = vpop.permute.xlu0 %913 }
 0x191   : > { %v964_v16 = vunpack.c.l.b16 %v914_v15 }
 0x193   : > { %v2786_v17 = vpack.c.b16 %v964_v16, %v964_v16 }
 0x195   : > { %966 = vrot.lane.b32.xlu2 %v2786_v17, %s2364_s27 }
 0x198   : > { %v920_v20 = vpop.permute.xlu0 %919 }
 0x199   : > { %v926_v21 = vsel %vm921_vm2, %v920_v20, 0 }
 0x19a   : > { %935 = vmatpush.bf16.xpose.msra.mxu1 %v926_v21 }
 0x19d   : > { %989 = vrot.lane.b32.xlu2 %v2790_v22, %s2364_s27 }
 0x1a1   : > { %1703 = vmatmul.msk.bf16.vlgmr.msra.gmra.mxu1 %vm921_vm2, %v909_v8 }
 0x1ef   : > { %v967_v23 = vpop.permute.xlu2 %966 }
 0x1f0   : > { %v972_v24 = vsel %vm921_vm2, %v967_v23, 0 }
 0x1f1   : > { %981 = vmatpush.bf16.xpose.msra.mxu3 %v972_v24 }
 0x1f7   : > { %v990_v25 = vpop.permute.xlu2 %989 }
 0x1f8   : > { %1705 = vmatmul.msk.bf16.vlgmr.msra.gmra.mxu3 %vm921_vm2, %v914_v15  ;;  %v995_v26 = vsel %vm921_vm2, %v990_v25, 0 }
 0x1f9   : > { %1004 = vmatpush.bf16.xpose.msrb.mxu0 %v995_v26 }
 0x1ff   : > { %v944_v27 = vpop.permute.xlu1 %943 }
 0x200   : > { %1706 = vmatmul.msk.bf16.vlgmr.msrb.gmra.mxu0 %vm921_vm2, %v916_v18  ;;  %v949_v28 = vsel %vm921_vm2, %v944_v27, 0 }
 0x201   : > { %958 = vmatpush.bf16.xpose.msra.mxu2 %v949_v28 }
 0x208   : > { %1704 = vmatmul.msk.bf16.vlgmr.msra.gmra.mxu2 %vm921_vm2, %v912_v12 }
 0x21e   : > { %v937_v29 = vpop.f32.mrf.mxu1 }
 0x21f   : > { %v1010_v40 = vmul.f32 0.35355338, %v937_v29 }
 0x221   : > { %v1017_v45 = vadd.f32 %v1015_v36, %v1010_v40 }
 0x223   : > { %v1021_v47 = vsel %vm921_vm2, %v1017_v45, -inf }
 0x226   : > { %v939_v30 = vpop.f32.mrf.mxu1 }
 0x27b   : > { %v983_v34 = vpop.f32.mrf.mxu3 }
 0x27c   : > { %v1012_v35 = vmul.f32 0.35355338, %v983_v34 }
 0x27d   : > { %v1006_v37 = vpop.f32.mrf.mxu0 }
 0x27e   : > { %v1013_v38 = vmul.f32 0.35355338, %v1006_v37  ;;  %v1019_v39 = vadd.f32 %v1015_v36, %v1012_v35 }
 0x280   : > { %v1027_v41 = vsel %vm921_vm2, %v1019_v39, -inf  ;;  %v1020_v42 = vadd.f32 %v1015_v36, %v1013_v38 }
 0x281   : > { %1028 = vmax.xlane.f32.xlu2 %v1027_v41 }
 0x282   : > { %v1030_v43 = vsel %vm921_vm2, %v1020_v42, -inf }
 0x283   : > { %v985_v44 = vpop.f32.mrf.mxu3  ;;  %1031 = vmax.xlane.f32.xlu0 %v1030_v43  ;;  %v1756_v43 = vld [vmem:[%s2751_s8] sm:$0xff] }
 0x285   : > { %v1008_v46 = vpop.f32.mrf.mxu0 }
 0x289   : > { %1022 = vmax.xlane.f32.xlu2 %v1021_v47 }
 0x28b   : > { %v960_v48 = vpop.f32.mrf.mxu2 }
 0x28c   : > { %v1011_v49 = vmul.f32 0.35355338, %v960_v48 }
 0x28e   : > { %v1018_v50 = vadd.f32 %v1015_v36, %v1011_v49 }
 0x290   : > { %v1024_v51 = vsel %vm921_vm2, %v1018_v50, -inf }
 0x291   : > { %1025 = vmax.xlane.f32.xlu1 %v1024_v51  ;;  %v1916_v51 = vld [vmem:[%s3010_s29] ss:$0 sm:$0xff] }
 0x293   : > { %v962_v52 = vpop.f32.mrf.mxu2 }
 0x2f4   : > { %v1029_v53 = vpop.xlane.xlu2 %1028 }
 0x2f5   : > { %v1035_v54 = vsub.f32 %v1019_v39, %v1029_v53 }
 0x2f6   : > { %v1032_v55 = vpop.xlane.xlu0 %1031 }
 0x2f7   : > { %v1041_v56 = vmul.f32 1.442695, %v1035_v54  ;;  %v1036_v57 = vsub.f32 %v1020_v42, %v1032_v55  ;;  %v1757_v42 = vld [vmem:[%s2751_s8 + $0x8] sm:$0xff]  ;;  %s3011_s8 = scalar_lea.vmem [#allocation10], %s2712_s2 }
 0x2f9   : > { %1923 = vpow2.f32 %v1041_v56  ;;  %v1043_v58 = vmul.f32 1.442695, %v1036_v57  ;;  %v2369_v57 = vmov 32.0  }
 0x2fb   : > { %1925 = vpow2.f32 %v1043_v58 }
 0x2fc   : > { %v1023_v5 = vpop.xlane.xlu2 %1022 }
 0x2fd   : > { %v1033_v6 = vsub.f32 %v1017_v45, %v1023_v5  ;;  %v1759_v5 = vld [vmem:[%s2756_s9 + $0x8] sm:$0xff] }
 0x2ff   : > { %v1924_v59 = vpop.eup %1923  ;;  %v1037_v7 = vmul.f32 1.442695, %v1033_v6  ;;  %v1758_v6 = vld [vmem:[%s2756_s9] sm:$0xff]  ;;  %s3012_s9 = scalar_lea.vmem [#allocation11], %s2712_s2  ;;  %s2237_s2 = scalar_lea.hbm %s3017_s6, 16 }
 0x300   : > { %v1051_v60 = vsel %vm921_vm2, %v1924_v59, 0.0 }
 0x301   : > { %v1926_v61 = vpop.eup %1925  ;;  %1052 = vadd.xlane.f32.xlu2 %v1051_v60 }
 0x302   : > { %v1054_v62 = vsel %vm921_vm2, %v1926_v61, 0.0 }
 0x303   : > { %1055 = vadd.xlane.f32.xlu0 %v1054_v62 }
 0x304   : > { %v1026_v63 = vpop.xlane.xlu1 %1025 }
 0x305   : > { %v1034_v0 = vsub.f32 %v1018_v50, %v1026_v63 }
 0x307   : > { %v1039_v1 = vmul.f32 1.442695, %v1034_v0 }
 0x309   : > { %1927 = vpow2.f32 %v1039_v1 }
 0x30a   : > { %1929 = vpow2.f32 %v1037_v7 }
 0x30f   : > { %v1928_v2 = vpop.eup %1927 }
 0x310   : > { %v1048_v4 = vsel %vm921_vm2, %v1928_v2, 0.0  ;;  %v1930_v8 = vpop.eup %1929 }
 0x311   : > { %1049 = vadd.xlane.f32.xlu1 %v1048_v4  ;;  %v1045_v9 = vsel %vm921_vm2, %v1930_v8, 0.0 }
 0x317   : > { %1133 = vrot.lane.b32.xlu0 %v2790_v22, %s2365_s15 }
 0x319   : > { %1112 = vrot.lane.b32.xlu2 %v2786_v17, %s2365_s15 }
 0x31f   : > { %1069 = vrot.lane.b32.xlu0 %v2780_v11, %s2365_s15 }
 0x32a   : > { %1091 = vrot.lane.b32.xlu1 %v2783_v14, %s2365_s15 }
 0x354   : > { %1046 = vadd.xlane.f32.xlu1 %v1045_v9 }
 0x374   : > { %v1053_v10 = vpop.xlane.xlu2 %1052 }
 0x375   : > { %1931 = vrcp.f32 %v1053_v10 }
 0x376   : > { %v1056_v15 = vpop.xlane.xlu0 %1055 }
 0x377   : > { %1933 = vrcp.f32 %v1056_v15 }
 0x37b   : > { %v1932_v12 = vpop.eup %1931 }
 0x37c   : > { %v1063_v13 = vmul.f32 %v1932_v12, %v1924_v59  ;;  %v1113_v16 = vpop.permute.xlu2 %1112 }
 0x37d   : > { %v1118_v17 = vsel %vm1074_vm3, %v1113_v16, 0  ;;  %v1934_v14 = vpop.eup %1933 }
 0x37e   : > { %1127 = vmatpush.bf16.msrb.mxu3 %v1118_v17  ;;  %v1067_v11 = vpack.c.bf16 %v1063_v13, %v1063_v13  ;;  %v1064_v18 = vmul.f32 %v1934_v14, %v1926_v61 }
 0x380   : > { %v1068_v21 = vpack.c.bf16 %v1064_v18, %v1064_v18  ;;  %v1918_v18 = vld [vmem:[%s3012_s9] ss:$0 sm:$0xff] }
 0x381   : > { %1709 = vmatmul.msk.bf16.vlgmr.msrb.gmra.mxu3 %vm921_vm2, %v1067_v11  ;;  %v1917_v11 = vld [vmem:[%s3011_s8] ss:$0 sm:$0xff] }
 0x384   : > { %v1050_v22 = vpop.xlane.xlu1 %1049 }
 0x385   : > { %1935 = vrcp.f32 %v1050_v22 }
 0x389   : > { %v1134_v19 = vpop.permute.xlu0 %1133 }
 0x38a   : > { %v1139_v20 = vsel %vm1074_vm3, %v1134_v19, 0 }
 0x38b   : > { %1148 = vmatpush.bf16.msra.mxu0 %v1139_v20  ;;  %v1936_v25 = vpop.eup %1935 }
 0x38c   : > { %v1062_v26 = vmul.f32 %v1936_v25, %v1928_v2  ;;  %v1761_v25 = vld [vmem:[%s2762_s4 + $0x8] sm:$0xff] }
 0x38e   : > { %1710 = vmatmul.msk.bf16.vlgmr.msra.gmra.mxu0 %vm921_vm2, %v1068_v21  ;;  %v1066_v29 = vpack.c.bf16 %v1062_v26, %v1062_v26  ;;  %v1760_v26 = vld [vmem:[%s2762_s4] sm:$0xff] }
 0x391   : > { %v1070_v23 = vpop.permute.xlu0 %1069 }
 0x392   : > { %v1076_v24 = vsel %vm1074_vm3, %v1070_v23, 0  ;;  %v1763_v23 = vld [vmem:[%s2762_s4 + $0x18] sm:$0xff] }
 0x393   : > { %1085 = vmatpush.bf16.msrb.mxu1 %v1076_v24  ;;  %1339 = vmatpush.bf16.msra.mxu3 %v1763_v23  ;;  %v1762_v24 = vld [vmem:[%s2762_s4 + $0x10] sm:$0xff] }
 0x397   : > { %1201 = vmatpush.bf16.msra.mxu1 %v1757_v42  ;;  %1340 = vmatpush.bf16.msra.mxu3 %v1762_v24 }
 0x39b   : > { %1202 = vmatpush.bf16.msra.mxu1 %v1756_v43  ;;  %1341 = vmatpush.bf16.msra.mxu3 %v1761_v25 }
 0x39c   : > { %v1092_v27 = vpop.permute.xlu1 %1091 }
 0x39d   : > { %v1097_v28 = vsel %vm1074_vm3, %v1092_v27, 0  ;;  %v1919_v27 = vld [vmem:[%s853_s3] ss:$0 sm:$0xff]  ;;  %s1747_s3 = sshll.u32 %s3015_s16, 3 }
 0x39e   : > { %1106 = vmatpush.bf16.msrb.mxu2 %v1097_v28  ;;  %s1393_s7 = scalar_lea.hbm %s3017_s6, %s1747_s3 }
 0x39f   : > { %1342 = vmatpush.bf16.msra.mxu3 %v1760_v26  ;;  %s1397_s27 = sshll.u32 %s1393_s7, 4  ;;  %s1398_s27 = int_to_ptr.hbm [resolvable:$true] %s1397_s27 }
 0x3a0   : > { %s2231_s15 = sshra.s32 %s1398_s27, 4  ;;  %s2232_s15 = int_to_ptr.hbm [resolvable:$true] %s2231_s15 }
 0x3a1   : > { %1708 = vmatmul.msk.bf16.vlgmr.msrb.gmra.mxu2 %vm921_vm2, %v1066_v29  ;;  %p2238_p5 = scmp.lt.s32.totalorder %s2232_s15, %s3017_s6 }
 0x3a2   : > { %1278 = vmatpush.bf16.msra.mxu2 %v1759_v5 }
 0x3a6   : > { %1279 = vmatpush.bf16.msra.mxu2 %v1758_v6 }
 0x3c7   : > { %v1047_v30 = vpop.xlane.xlu1 %1046 }
 0x3c8   : > { %1937 = vrcp.f32 %v1047_v30 }
 0x3c9   : > { %1939 = vrcp.f32 %v2369_v57 }
 0x3ce   : > { %v1938_v31 = vpop.eup %1937 }
 0x3cf   : > { %v1061_v32 = vmul.f32 %v1938_v31, %v1930_v8  ;;  %v1940_v58 = vpop.eup %1939 }
 0x3d0   : > { %v1215_v59 = vmul.f32 32.0, %v1940_v58  ;;  %vm1219_vm6 = vweird.f32 %v1940_v58 }
 0x3d1   : > { %v1065_v33 = vpack.c.bf16 %v1061_v32, %v1061_v32 }
 0x3d2   : > { %v1216_v60 = vsub.f32 1.0, %v1215_v59 }
 0x3d3   : > { %1707 = vmatmul.msk.bf16.vlgmr.msrb.gmra.mxu1 %vm921_vm2, %v1065_v33 }
 0x3d4   : > { %v1217_v61 = vmul.f32 %v1940_v58, %v1216_v60 }
 0x3d6   : > { %v1218_v62 = vadd.f32 %v1940_v58, %v1217_v61  ;;  %v1921_v61 = vld [vmem:[%s3016_s26] ss:$0 sm:$0xff] }
 0x3d8   : > { %v2830_v63 = vsel %vm1219_vm6, %v1940_v58, %v1218_v62 }
 0x404   : > { %v1129_v34 = vpop.f32.mrf.mxu3 }
 0x405   : > { %1159 = vrot.lane.b32.xlu0 %v1129_v34, %s2366_s10  ;;  %s2233_s10 = scalar_lea.hbm %s2232_s15, 8 }
 0x406   : > { %p2234_p12 = scmp.ne.s32.totalorder %s2232_s15, %s2233_s10  ;;  %p2239_p2 = scmp.lt.s32.totalorder %s2237_s2, %s2233_s10 }
 0x408   : > { %p2235_p13 = pnand %p2234_p12, %p2568_p8  ;;  %p2240_p6 = por %p2239_p2, %p2238_p5 }
 0x40a   : > { %p2236_p0 = pneg %p2235_p13 }
 0x40b   : > { %v1150_v35 = vpop.f32.mrf.mxu0 }
 0x40c   : > { %v1131_v36 = vpop.f32.mrf.mxu3  ;;  %p2241_p1 = pnand %p2240_p6, %p2236_p0 }
 0x413   : > { %v1152_v37 = vpop.f32.mrf.mxu0 }
 0x424   : > { %v1108_v38 = vpop.f32.mrf.mxu2 }
 0x425   : > { %1155 = vrot.lane.b32.xlu2 %v1108_v38, %s2367_s19 }
 0x42c   : > { %v1110_v39 = vpop.f32.mrf.mxu2 }
 0x42d   : > { %1163 = vrot.lane.b32.xlu2 %v1150_v35, %s2368_s5 }
 0x450   : > { %v1087_v40 = vpop.f32.mrf.mxu1 }
 0x458   : > { %v1089_v41 = vpop.f32.mrf.mxu1 }
 0x459   : > { %v1920_v41 = vld [vmem:[%s3014_s14] ss:$0 sm:$0xff] }
 0x477   : > { %v1160_v46 = vpop.permute.xlu0 %1159 }
 0x47f   : > { %v1156_v44 = vpop.permute.xlu2 %1155 }
 0x480   : > { %v1166_v45 = vsel %vm921_vm2, %v1087_v40, %v1156_v44 }
 0x481   : > { %v1168_v48 = vsel %vm1167_vm4, %v1166_v45, %v1160_v46 }
 0x487   : > { %v1164_v47 = vpop.permute.xlu2 %1163 }
 0x488   : > { %v1170_v49 = vsel %vm1169_vm5, %v1168_v48, %v1164_v47 }
 0x489   : > { %v1171_v50 = vpack.c.bf16 %v1170_v49, %v1170_v49 }
 0x48b   : > { %1719 = vmatmul.msk.bf16.vlgmr.msra.gmra.mxu1 %vm892_vm1, %v1171_v50 }
 0x508   : > { %v1204_v52 = vpop.f32.mrf.mxu1 }
 0x509   : > { %v1205_v53 = vadd.f32 %v1916_v51, %v1204_v52 }
 0x50b   : > { %v1208_v54 = vadd.f32 %v1205_v53, %v2773_v3 }
 0x50d   : > { %v1211_v55 = vsel %vm892_vm1, %v1208_v54, 0.0 }
 0x50e   : > { %1212 = vadd.xlane.f32.xlu0 %v1211_v55 }
 0x510   : > { %v1206_v56 = vpop.f32.mrf.mxu1 }
 0x581   : > { %v1213_v0 = vpop.xlane.xlu0 %1212 }
 0x582   : > { %v1221_v1 = vmul.f32 %v2830_v63, %v1213_v0  ;;  %v1922_v0 = vld [vmem:[%s735_s23] ss:$0 sm:$0xff] }
 0x584   : > { %v1222_v3 = vsub.f32 %v1208_v54, %v1221_v1 }
 0x586   : > { %v1223_v2 = vmul.f32 %v1222_v3, %v1222_v3 }
 0x588   : > { %v1224_v4 = vsel %vm892_vm1, %v1223_v2, 0.0 }
 0x589   : > { %1225 = vadd.xlane.f32.xlu2 %v1224_v4 }
 0x5fc   : > { %v1226_v7 = vpop.xlane.xlu2 %1225 }
 0x5fd   : > { %v1227_v8 = vmul.f32 %v1226_v7, %v2830_v63 }
 0x5ff   : > { %v1228_v9 = vadd.f32 1e-12, %v1227_v8 }
 0x601   : > { %1941 = vrsqrt.f32 %v1228_v9  ;;  %vm1235_vm8 = vweird.f32 %v1228_v9 }
 0x607   : > { %v1942_v10 = vpop.eup %1941 }
 0x608   : > { %v1230_v12 = vmul.f32 %v1942_v10, %v1228_v9  ;;  %vm1236_vm7 = vweird.f32 %v1942_v10 }
 0x609   : > { %vm1237_vm9 = vmor %vm1235_vm8, %vm1236_vm7 }
 0x60a   : > { %v1231_v13 = vmul.f32 %v1942_v10, %v1230_v12 }
 0x60c   : > { %v1232_v15 = vmul.f32 0.5, %v1231_v13 }
 0x60e   : > { %v1233_v16 = vsub.f32 1.5, %v1232_v15 }
 0x610   : > { %v1234_v17 = vmul.f32 %v1942_v10, %v1233_v16 }
 0x612   : > { %v1238_v14 = vsel %vm1237_vm9, %v1942_v10, %v1234_v17 }
 0x613   : > { %v1239_v19 = vmul.f32 %v1238_v14, %v1222_v3 }
 0x615   : > { %v1243_v20 = vmul.f32 %v1917_v11, %v1239_v19 }
 0x617   : > { %v1247_v21 = vadd.f32 %v1918_v18, %v1243_v20 }
 0x619   : > { %v1248_v22 = vpack.c.bf16 %v1247_v21, %v1247_v21 }
 0x61b   : > { %1728 = vmatmul.msk.bf16.vlgmr.msra.gmra.mxu2 %vm892_vm1, %v1248_v22 }
 0x69e   : > { %v1281_v28 = vpop.f32.mrf.mxu2 }
 0x69f   : > { %v1282_v29 = vadd.f32 %v1919_v27, %v1281_v28 }
 0x6a1   : > { %v1286_v30 = vmul.f32 0.044715, %v1282_v29  ;;  %v1285_v37 = vmul.f32 0.5, %v1282_v29 }
 0x6a3   : > { %v1287_v31 = vmul.f32 %v1286_v30, %v1282_v29 }
 0x6a5   : > { %v1288_v32 = vmul.f32 %v1287_v31, %v1282_v29 }
 0x6a6   : > { %v1283_v33 = vpop.f32.mrf.mxu2 }
 0x6a7   : > { %v1289_v34 = vadd.f32 %v1288_v32, %v1282_v29 }
 0x6a9   : > { %v1290_v35 = vmul.f32 0.7978846, %v1289_v34 }
 0x6ab   : > { %1943 = vtanh.f32 %v1290_v35 }
 0x6b1   : > { %v1944_v36 = vpop.eup %1943 }
 0x6b2   : > { %v1292_v38 = vadd.f32 1.0, %v1944_v36 }
 0x6b4   : > { %v1293_v39 = vmul.f32 %v1292_v38, %v1285_v37 }
 0x6b6   : > { %v1294_v40 = vpack.c.bf16 %v1293_v39, %v1293_v39 }
 0x6b8   : > { %1745 = vmatmul.msk.bf16.vlgmr.msra.gmra.mxu3 %vm1331_vm10, %v1294_v40 }
 0x73b   : > { %v1344_v42 = vpop.f32.mrf.mxu3 }
 0x73c   : > { %v1345_v43 = vadd.f32 %v1920_v41, %v1344_v42 }
 0x73e   : > { %v1348_v44 = vadd.f32 %v1345_v43, %v1247_v21 }
 0x740   : > { %v1351_v45 = vsel %vm892_vm1, %v1348_v44, 0.0 }
 0x741   : > { %1352 = vadd.xlane.f32.xlu1 %v1351_v45 }
 0x743   : > { %v1346_v46 = vpop.f32.mrf.mxu3 }
 0x7b4   : > { %v1353_v47 = vpop.xlane.xlu1 %1352 }
 0x7b5   : > { %v1354_v48 = vmul.f32 %v1353_v47, %v2830_v63 }
 0x7b7   : > { %v1355_v49 = vsub.f32 %v1348_v44, %v1354_v48 }
 0x7b9   : > { %v1356_v50 = vmul.f32 %v1355_v49, %v1355_v49 }
 0x7bb   : > { %v1357_v51 = vsel %vm892_vm1, %v1356_v50, 0.0 }
 0x7bc   : > { %1358 = vadd.xlane.f32.xlu1 %v1357_v51 }
 0x82f   : > { %v1359_v52 = vpop.xlane.xlu1 %1358 }
 0x830   : > { %v1360_v53 = vmul.f32 %v1359_v52, %v2830_v63 }
 0x832   : > { %v1361_v54 = vadd.f32 1e-12, %v1360_v53 }
 0x834   : > { %1945 = vrsqrt.f32 %v1361_v54  ;;  %vm1368_vm12 = vweird.f32 %v1361_v54 }
 0x83a   : > { %v1946_v55 = vpop.eup %1945 }
 0x83b   : > { %v1363_v56 = vmul.f32 %v1946_v55, %v1361_v54  ;;  %vm1369_vm11 = vweird.f32 %v1946_v55 }
 0x83c   : > { %vm1370_vm13 = vmor %vm1368_vm12, %vm1369_vm11 }
 0x83d   : > { %v1364_v57 = vmul.f32 %v1946_v55, %v1363_v56 }
 0x83f   : > { %v1365_v58 = vmul.f32 0.5, %v1364_v57 }
 0x841   : > { %v1366_v59 = vsub.f32 1.5, %v1365_v58 }
 0x843   : > { %v1367_v60 = vmul.f32 %v1946_v55, %v1366_v59 }
 0x845   : > { %v1371_v62 = vsel %vm1370_vm13, %v1946_v55, %v1367_v60 }
 0x846   : > { %v1372_v63 = vmul.f32 %v1371_v62, %v1355_v49 }
 0x848   : > { %v1376_v1 = vmul.f32 %v1921_v61, %v1372_v63 }
 0x84a   : > { %v1380_v3 = vadd.f32 %v1922_v0, %v1376_v1 }
 0x84c   : > { %1381 = vst.msk [vmem:[%s2767_s24] sm:$0xff] %vm892_vm1, %v1380_v3 }
 0x84d   : > { %2244 = shalt.err (!%p2241_p1)
}
 0x84e   : > { %1782 = dma.vmem_to_hbm [thread:$0]  (%p2568_p8), %s1396_s12, 128, %s1398_s27, %s1383_s25  }
 0x84f PF: > { %s3019_s1 = sld [smem:[#allocation30_spill]] }
 0x850   : > { %s3020_s24 = sld [smem:[#allocation26_spill]] }
 0x855   : > { %p1817_p3 = scmp.ge.s32.totalorder %s3019_s1, 2 }
 0x856   : > { %s1409_s9 = sand.u32 1, %s3020_s24  }
 0x857   : > { %p1813_p10 = pnand %p1817_p3, %p2575_p9  ;;  %s1410_s20 = scalar_lea.sflag [#allocation4], %s1409_s9 }
 0x859   : > { %p1814_p11 = pneg %p1813_p10 }
 0x85b   : > { %2314 = dma.done.wait (%p1814_p11), %s1410_s20, 128  }
 0x85c   : > { %2316 = vsyncadd (%p1814_p11), %s1410_s20, 4294967168  ;;  %s42_s23 = sadd.s32 1, %s3019_s1   ;;  %s3022_s18 = sld [smem:[#allocation25_spill]] }
 0x85d   : > { %p39_p4 = scmp.ge.s32.totalorder %s42_s23, 14   ;;  %s3023_s15 = sld [smem:[#allocation33_spill]] }
 0x85e   : > { %s3024_s28 = sld [smem:[#allocation27_spill]]  ;;  %s3028_s29 = smov %s2323_s30 }
 0x85f   : > { %s3025_s14 = sld [smem:[#allocation34_spill]]  ;;  %s3030_s16 = smov %s2335_s17 }
 0x860   : > { %s3026_s3 = sld [smem:[#allocation31_spill]]  ;;  %s3033_s19 = smov %s2351_s21 }
 0x861   : > { %s3027_s26 = sld [smem:[#allocation32_spill]]  ;;  %s3034_s20 = smov %s2355_s22 }
 0x862   : > { %s3029_s30 = smov %s3022_s18 }
 0x863   :  { %41 = sbr.rel (!%p39_p4) target bundleno = 32 (0x20), region = 236 }
 0x864   : > { %s3031_s17 = smov %s3024_s28 }
 0x865   : > { %s3032_s18 = smov %s3025_s14 }
 0x866   : > { %s3035_s21 = smov %s3026_s3 }
 0x867   : > { %s3036_s22 = smov %s3027_s26 }
 0x868   :  { %1416 = vsyncpa [#allocation3], 1 }
 0x869   :  { %1418 = vsyncpa [#allocation3 + $0x1], 1 }
 0x86a   :  { %1419 = vsyncpa [#allocation6], 1 }
 0x86b   :  { %1421 = vsyncpa [#allocation6 + $0x1], 1 }
 0x86c   :  { %1422 = vsyncpa [#allocation9], 1 }
 0x86d   :  { %1424 = vsyncpa [#allocation9 + $0x1], 1 }
 0x86e   :  { %1425 = vsyncpa [#allocation12], 1 }
 0x86f   :  { %1427 = vsyncpa [#allocation12 + $0x1], 1 }
 0x870   :  { %1428 = vsyncpa [#allocation15], 1 }
 0x871   :  { %1430 = vsyncpa [#allocation15 + $0x1], 1 }
 0x872   :  { %1431 = vsyncpa [#allocation4], 1 }
 0x873   :  { %1433 = vsyncpa [#allocation4 + $0x1], 1 }

</bundles_post_ra>
